<compile_context>
chip_gen: v5e
topology: v5e:2x2
jax: 0.10.0
libtpu: 0.0.40
codegen_flags: <defaults>
</compile_context>

<pallas_src>
import math
import jax
import jax.numpy as jnp
from jax import lax
from jax.experimental import pallas as pl
from jax.experimental.pallas import tpu as pltpu

# ----------------------- tiny synthetic BERT config -----------------------
VOCAB = 100
TYPE_VOCAB = 2
MAX_POS = 16
HIDDEN = 32
N_HEADS = 2
HEAD_DIM = HIDDEN // N_HEADS
INTERMEDIATE = 64
N_LAYERS = 2
LN_EPS = 1e-12
ATTN_SCALE = 1.0 / math.sqrt(HEAD_DIM)

H_PAD = 128          # lane-padded hidden width (lane-dense activations & output store)
I_PAD = 128          # lane-padded FFN intermediate width
ONE_COL = HIDDEN     # column carrying a constant 1.0 (bias carrier for folded biases)

BATCH = 2
SEQ = 8

# rows of the packed per-layer vector blob (remaining biases + LayerNorm params)
ROW_BO, ROW_B2, ROW_LN1G, ROW_LN1B, ROW_LN2G, ROW_LN2B = range(6)


# --------------------------- fused Pallas kernel ---------------------------
def fused_bert_kernel(emb_ref, neg_ref, embln_ref,
                      wq_ref, wk_ref, wv_ref, wo_ref, w1_ref, w2_ref, vecs_ref,
                      o_ref):
    # Valid-feature lane mask: real hidden features in cols [0, HIDDEN); col ONE_COL is
    # the constant-1 bias carrier; remaining pad lanes are zero.
    lane = lax.broadcasted_iota(jnp.int32, (1, H_PAD), 1)
    vmask = (lane < HIDDEN).astype(jnp.float32)

    def layernorm(x, gamma, beta):
        # LayerNorm over the HIDDEN valid lanes only; padded gamma/beta keep pad lanes
        # at 0 and restore the constant-1 carrier column (beta[ONE_COL] = 1).
        xm = x * vmask
        mu = jnp.sum(xm, axis=-1, keepdims=True) * (1.0 / HIDDEN)
        d = (x - mu) * vmask
        var = jnp.sum(d * d, axis=-1, keepdims=True) * (1.0 / HIDDEN)
        return d * lax.rsqrt(var + LN_EPS) * gamma + beta

    embln = embln_ref[...]                       # (2, H_PAD): row0=gamma, row1=beta
    x = layernorm(emb_ref[0], embln[0:1, :], embln[1:2, :])   # (S, H_PAD) f32
    neg = neg_ref[0]                             # (1, S) additive key-padding mask

    def layer_body(l, x):
        vecs = vecs_ref[l]                       # (8, H_PAD) packed bo/b2/LN params
        xb = jnp.broadcast_to(x.astype(jnp.bfloat16)[None], (N_HEADS, SEQ, H_PAD))

        # Head-batched Q/K/V projections (bias folded into row ONE_COL of the weights,
        # attention scale folded into Wq at init). No lane slicing, no concat.
        q = jnp.einsum('nsh,nhd->nsd', xb, wq_ref[l], preferred_element_type=jnp.float32)
        k = jnp.einsum('nsh,nhd->nsd', xb, wk_ref[l], preferred_element_type=jnp.float32)
        v = jnp.einsum('nsh,nhd->nsd', xb, wv_ref[l], preferred_element_type=jnp.float32)

        s = jnp.einsum('nqd,nkd->nqk', q.astype(jnp.bfloat16), k.astype(jnp.bfloat16),
                       preferred_element_type=jnp.float32) + neg[None, :, :]
        s = s - jnp.max(s, axis=-1, keepdims=True)
        p = jnp.exp(s)
        probs = p * pl.reciprocal(jnp.sum(p, axis=-1, keepdims=True), approx=True)

        ctx = jnp.einsum('nqk,nkd->nqd', probs.astype(jnp.bfloat16), v.astype(jnp.bfloat16),
                         preferred_element_type=jnp.float32)
        attn = jnp.einsum('nsd,ndh->nsh', ctx.astype(jnp.bfloat16), wo_ref[l],
                          preferred_element_type=jnp.float32).sum(axis=0)
        attn = attn + vecs[ROW_BO:ROW_BO + 1, :]
        h1 = layernorm(attn + x,
                       vecs[ROW_LN1G:ROW_LN1G + 1, :], vecs[ROW_LN1B:ROW_LN1B + 1, :])

        # FFN: b1 folded via the constant-1 column of h1; lane-dense (S,128)x(128,128) matmuls.
        inter = jnp.dot(h1.astype(jnp.bfloat16), w1_ref[l],
                        preferred_element_type=jnp.float32)
        # TODO(synk): HF BERT default is exact (erf) GELU; tanh approximation used here.
        inter = jax.nn.gelu(inter, approximate=True)
        ffn = jnp.dot(inter.astype(jnp.bfloat16), w2_ref[l],
                      preferred_element_type=jnp.float32)
        ffn = ffn + vecs[ROW_B2:ROW_B2 + 1, :]
        return layernorm(ffn + h1,
                         vecs[ROW_LN2G:ROW_LN2G + 1, :], vecs[ROW_LN2B:ROW_LN2B + 1, :])

    x = lax.fori_loop(0, N_LAYERS, layer_body, x, unroll=True)
    o_ref[0] = x                                 # lane-dense (S, 128) store


# --------------------------- Pallas wrapper --------------------------------
def fused_bert_forward(emb_pad, neg_mask, params):
    L = N_LAYERS
    return pl.pallas_call(
        fused_bert_kernel,
        out_shape=jax.ShapeDtypeStruct((BATCH, SEQ, H_PAD), jnp.float32),
        grid=(BATCH,),
        in_specs=[
            pl.BlockSpec((1, SEQ, H_PAD), lambda b: (b, 0, 0)),                 # embeddings (per seq)
            pl.BlockSpec((1, 1, SEQ), lambda b: (b, 0, 0)),                     # key padding mask
            pl.BlockSpec((2, H_PAD), lambda b: (0, 0)),                         # emb LN gamma/beta
            pl.BlockSpec((L, N_HEADS, H_PAD, HEAD_DIM), lambda b: (0, 0, 0, 0)),  # Wq (heads, + bias row)
            pl.BlockSpec((L, N_HEADS, H_PAD, HEAD_DIM), lambda b: (0, 0, 0, 0)),  # Wk
            pl.BlockSpec((L, N_HEADS, H_PAD, HEAD_DIM), lambda b: (0, 0, 0, 0)),  # Wv
            pl.BlockSpec((L, N_HEADS, HEAD_DIM, H_PAD), lambda b: (0, 0, 0, 0)),  # Wo (heads)
            pl.BlockSpec((L, H_PAD, I_PAD), lambda b: (0, 0, 0)),                 # W1 (+ b1 row)
            pl.BlockSpec((L, I_PAD, H_PAD), lambda b: (0, 0, 0)),                 # W2
            pl.BlockSpec((L, 8, H_PAD), lambda b: (0, 0, 0)),                     # bo/b2/LN params
        ],
        out_specs=pl.BlockSpec((1, SEQ, H_PAD), lambda b: (b, 0, 0)),
        compiler_params=pltpu.CompilerParams(dimension_semantics=("parallel",)),
    )(emb_pad, neg_mask, params["emb_ln"], params["wq"], params["wk"], params["wv"],
      params["wo"], params["w1"], params["w2"], params["vecs"])


# --------------------------- parameter setup -------------------------------
def init_params(key):
    def normal(k, shape):
        return 0.02 * jax.random.normal(k, shape, dtype=jnp.float32)

    keys = jax.random.split(key, 4 + N_LAYERS)
    word_emb = normal(keys[0], (VOCAB, HIDDEN))
    pos_emb = normal(keys[1], (MAX_POS, HIDDEN))
    type_emb = normal(keys[2], (TYPE_VOCAB, HIDDEN))

    emb_ln = jnp.zeros((2, H_PAD), jnp.float32)
    emb_ln = emb_ln.at[0, :HIDDEN].set(1.0)      # gamma
    emb_ln = emb_ln.at[1, ONE_COL].set(1.0)      # beta pad: creates the constant-1 column

    def head_proj(w, b):
        # (H, H) weight + (H,) bias -> (N_HEADS, H_PAD, HEAD_DIM); bias lives in row ONE_COL.
        wh = w.reshape(HIDDEN, N_HEADS, HEAD_DIM).transpose(1, 0, 2)
        bh = b.reshape(N_HEADS, HEAD_DIM)
        out = jnp.zeros((N_HEADS, H_PAD, HEAD_DIM), jnp.float32)
        out = out.at[:, :HIDDEN, :].set(wh)
        out = out.at[:, ONE_COL, :].set(bh)
        return out

    wq_l, wk_l, wv_l, wo_l, w1_l, w2_l, vecs_l = ([] for _ in range(7))
    for li in range(N_LAYERS):
        lk = jax.random.split(keys[4 + li], 6)
        wq = normal(lk[0], (HIDDEN, HIDDEN)) * ATTN_SCALE   # scale folded into Q weights
        wk = normal(lk[1], (HIDDEN, HIDDEN))
        wv = normal(lk[2], (HIDDEN, HIDDEN))
        wo = normal(lk[3], (HIDDEN, HIDDEN))
        w1 = normal(lk[4], (HIDDEN, INTERMEDIATE))
        w2 = normal(lk[5], (INTERMEDIATE, HIDDEN))
        bq = jnp.zeros((HIDDEN,), jnp.float32) * ATTN_SCALE  # scale folded into Q bias too
        bk = bv = bo = b2 = jnp.zeros((HIDDEN,), jnp.float32)
        b1 = jnp.zeros((INTERMEDIATE,), jnp.float32)

        wq_l.append(head_proj(wq, bq))
        wk_l.append(head_proj(wk, bk))
        wv_l.append(head_proj(wv, bv))

        woh = jnp.zeros((N_HEADS, HEAD_DIM, H_PAD), jnp.float32)
        woh = woh.at[:, :, :HIDDEN].set(wo.reshape(N_HEADS, HEAD_DIM, HIDDEN))
        wo_l.append(woh)

        w1p = jnp.zeros((H_PAD, I_PAD), jnp.float32)
        w1p = w1p.at[:HIDDEN, :INTERMEDIATE].set(w1)
        w1p = w1p.at[ONE_COL, :INTERMEDIATE].set(b1)         # b1 folded via constant-1 column
        w1_l.append(w1p)

        w2p = jnp.zeros((I_PAD, H_PAD), jnp.float32)
        w2p = w2p.at[:INTERMEDIATE, :HIDDEN].set(w2)
        w2_l.append(w2p)

        vec = jnp.zeros((8, H_PAD), jnp.float32)
        vec = vec.at[ROW_BO, :HIDDEN].set(bo)
        vec = vec.at[ROW_B2, :HIDDEN].set(b2)
        vec = vec.at[ROW_LN1G, :HIDDEN].set(1.0)
        vec = vec.at[ROW_LN1B, ONE_COL].set(1.0)              # beta restores constant-1 column
        vec = vec.at[ROW_LN2G, :HIDDEN].set(1.0)
        vec = vec.at[ROW_LN2B, ONE_COL].set(1.0)
        vecs_l.append(vec)

    return {
        "word_emb": word_emb, "pos_emb": pos_emb, "type_emb": type_emb,
        "emb_ln": emb_ln,
        "wq": jnp.stack(wq_l).astype(jnp.bfloat16),
        "wk": jnp.stack(wk_l).astype(jnp.bfloat16),
        "wv": jnp.stack(wv_l).astype(jnp.bfloat16),
        "wo": jnp.stack(wo_l).astype(jnp.bfloat16),
        "w1": jnp.stack(w1_l).astype(jnp.bfloat16),
        "w2": jnp.stack(w2_l).astype(jnp.bfloat16),
        "vecs": jnp.stack(vecs_l),
    }


# --------------------------- forward (BertTextNet) -------------------------
def bert_text_net_forward(params, tokens, segments, input_masks):
    B, S = tokens.shape
    positions = jnp.arange(S, dtype=jnp.int32)

    # embedding gathers (glue); LayerNorm happens inside the fused kernel
    summed = (params["word_emb"][tokens]
              + params["pos_emb"][positions][None, :, :]
              + params["type_emb"][segments]).astype(jnp.float32)
    emb_pad = jnp.pad(summed, ((0, 0), (0, 0), (0, H_PAD - HIDDEN)))   # lane-pad to 128

    # Per-sequence additive key-padding mask (HF-style -10000 on masked keys).
    # Padded QUERY rows produce junk hidden states; only row 0 ([CLS]) is consumed below.
    neg_mask = jnp.where(input_masks > 0, 0.0, -10000.0).astype(jnp.float32)[:, None, :]

    out = fused_bert_forward(emb_pad, neg_mask, params)     # (B, S, H_PAD)

    # output[0][:, 0, :] -> [CLS] token embedding of the last hidden state
    return out[:, 0, :HIDDEN]


if __name__ == "__main__":
    key = jax.random.PRNGKey(0)
    pkey, tkey = jax.random.split(key)
    params = init_params(pkey)

    tokens = jax.random.randint(tkey, (BATCH, SEQ), 0, VOCAB, dtype=jnp.int32)
    tokens = tokens.at[:, 0].set(1)  # pretend [CLS] id
    segments = jnp.zeros((BATCH, SEQ), dtype=jnp.int32)
    input_masks = jnp.ones((BATCH, SEQ), dtype=jnp.int32)
    input_masks = input_masks.at[1, SEQ - 3:].set(0)  # pad tail of second sequence

    text_embeddings = bert_text_net_forward(params, tokens, segments, input_masks)
    jax.block_until_ready(text_embeddings)
    assert text_embeddings.shape == (BATCH, HIDDEN)
    assert bool(jnp.all(jnp.isfinite(text_embeddings)))
    print("KERNEL_OK")
</pallas_src>

<mosaic_0001>
module attributes {stable_mosaic.version = 11 : i64} {
  func.func @fused_bert_kernel(%arg0: i32, %arg1: memref<1x8x128xf32, #tpu.memory_space<vmem>>, %arg2: memref<1x1x8xf32, #tpu.memory_space<vmem>>, %arg3: memref<2x128xf32, #tpu.memory_space<vmem>>, %arg4: memref<2x2x128x16xbf16, #tpu.memory_space<vmem>>, %arg5: memref<2x2x128x16xbf16, #tpu.memory_space<vmem>>, %arg6: memref<2x2x128x16xbf16, #tpu.memory_space<vmem>>, %arg7: memref<2x2x16x128xbf16, #tpu.memory_space<vmem>>, %arg8: memref<2x128x128xbf16, #tpu.memory_space<vmem>>, %arg9: memref<2x128x128xbf16, #tpu.memory_space<vmem>>, %arg10: memref<2x8x128xf32, #tpu.memory_space<vmem>>, %arg11: memref<1x8x128xf32, #tpu.memory_space<vmem>>) attributes {dimension_semantics = [#tpu.dimension_semantics<parallel>], iteration_bounds = array<i64: 2>, scalar_prefetch = 0 : i64, scratch_operands = 0 : i64, tpu.core_type = #tpu.core_type<tc>, window_params = [{transform_indices = @transform_0, window_bounds = array<i64: 1, 8, 128>}, {transform_indices = @transform_1, window_bounds = array<i64: 1, 1, 8>}, {pipeline_mode = #tpu.pipeline_mode<synchronous>, transform_indices = @transform_2, window_bounds = array<i64: 2, 128>}, {pipeline_mode = #tpu.pipeline_mode<synchronous>, transform_indices = @transform_3, window_bounds = array<i64: 2, 2, 128, 16>}, {pipeline_mode = #tpu.pipeline_mode<synchronous>, transform_indices = @transform_4, window_bounds = array<i64: 2, 2, 128, 16>}, {pipeline_mode = #tpu.pipeline_mode<synchronous>, transform_indices = @transform_5, window_bounds = array<i64: 2, 2, 128, 16>}, {pipeline_mode = #tpu.pipeline_mode<synchronous>, transform_indices = @transform_6, window_bounds = array<i64: 2, 2, 16, 128>}, {pipeline_mode = #tpu.pipeline_mode<synchronous>, transform_indices = @transform_7, window_bounds = array<i64: 2, 128, 128>}, {pipeline_mode = #tpu.pipeline_mode<synchronous>, transform_indices = @transform_8, window_bounds = array<i64: 2, 128, 128>}, {pipeline_mode = #tpu.pipeline_mode<synchronous>, transform_indices = @transform_9, window_bounds = array<i64: 2, 8, 128>}, {transform_indices = @transform_10, window_bounds = array<i64: 1, 8, 128>}]} {
    %0 = tpu.iota {dimensions = array<i32: 1>} : vector<1x128xi32>
    %c32_i32 = arith.constant 32 : i32
    %1 = vector.broadcast %c32_i32 : i32 to vector<1x128xi32>
    %2 = arith.cmpi slt, %0, %1 : vector<1x128xi32>
    %3 = arith.extui %2 : vector<1x128xi1> to vector<1x128xi32>
    %4 = arith.sitofp %3 : vector<1x128xi32> to vector<1x128xf32>
    %c0 = arith.constant 0 : index
    %c0_0 = arith.constant 0 : index
    %5 = vector.load %arg3[%c0, %c0_0] : memref<2x128xf32, #tpu.memory_space<vmem>>, vector<2x128xf32>
    %c0_1 = arith.constant 0 : index
    %c0_2 = arith.constant 0 : index
    %c0_3 = arith.constant 0 : index
    %6 = vector.load %arg1[%c0_1, %c0_2, %c0_3] : memref<1x8x128xf32, #tpu.memory_space<vmem>>, vector<1x8x128xf32>
    %7 = vector.shape_cast %6 : vector<1x8x128xf32> to vector<8x128xf32>
    %8 = vector.extract_strided_slice %5 {offsets = [0, 0], sizes = [1, 128], strides = [1, 1]} : vector<2x128xf32> to vector<1x128xf32>
    %9 = vector.extract_strided_slice %5 {offsets = [1, 0], sizes = [1, 128], strides = [1, 1]} : vector<2x128xf32> to vector<1x128xf32>
    %10 = vector.broadcast %4 : vector<1x128xf32> to vector<8x128xf32>
    %11 = arith.mulf %7, %10 : vector<8x128xf32>
    %cst = arith.constant dense<0.000000e+00> : vector<8xf32>
    %12 = vector.multi_reduction <add>, %11, %cst [1] : vector<8x128xf32> to vector<8xf32>
    %13 = vector.shape_cast %12 : vector<8xf32> to vector<8x1xf32>
    %cst_4 = arith.constant 3.125000e-02 : f32
    %14 = vector.broadcast %cst_4 : f32 to vector<8x1xf32>
    %15 = arith.mulf %13, %14 : vector<8x1xf32>
    %16 = vector.broadcast %15 : vector<8x1xf32> to vector<8x128xf32>
    %17 = arith.subf %7, %16 : vector<8x128xf32>
    %18 = vector.broadcast %4 : vector<1x128xf32> to vector<8x128xf32>
    %19 = arith.mulf %17, %18 : vector<8x128xf32>
    %20 = arith.mulf %19, %19 : vector<8x128xf32>
    %cst_5 = arith.constant dense<0.000000e+00> : vector<8xf32>
    %21 = vector.multi_reduction <add>, %20, %cst_5 [1] : vector<8x128xf32> to vector<8xf32>
    %22 = vector.shape_cast %21 : vector<8xf32> to vector<8x1xf32>
    %cst_6 = arith.constant 3.125000e-02 : f32
    %23 = vector.broadcast %cst_6 : f32 to vector<8x1xf32>
    %24 = arith.mulf %22, %23 : vector<8x1xf32>
    %cst_7 = arith.constant 9.99999996E-13 : f32
    %25 = vector.broadcast %cst_7 : f32 to vector<8x1xf32>
    %26 = arith.addf %24, %25 : vector<8x1xf32>
    %27 = math.rsqrt %26 : vector<8x1xf32>
    %28 = vector.broadcast %27 : vector<8x1xf32> to vector<8x128xf32>
    %29 = arith.mulf %19, %28 : vector<8x128xf32>
    %30 = vector.broadcast %8 : vector<1x128xf32> to vector<8x128xf32>
    %31 = arith.mulf %29, %30 : vector<8x128xf32>
    %32 = vector.broadcast %9 : vector<1x128xf32> to vector<8x128xf32>
    %33 = arith.addf %31, %32 : vector<8x128xf32>
    %c0_8 = arith.constant 0 : index
    %c0_9 = arith.constant 0 : index
    %c0_10 = arith.constant 0 : index
    %34 = vector.load %arg2[%c0_8, %c0_9, %c0_10] : memref<1x1x8xf32, #tpu.memory_space<vmem>>, vector<1x1x8xf32>
    %35 = vector.shape_cast %34 : vector<1x1x8xf32> to vector<1x8xf32>
    %c0_i32 = arith.constant 0 : i32
    %36 = arith.index_cast %c0_i32 : i32 to index
    %c0_11 = arith.constant 0 : index
    %c0_12 = arith.constant 0 : index
    %37 = vector.load %arg10[%36, %c0_11, %c0_12] : memref<2x8x128xf32, #tpu.memory_space<vmem>>, vector<1x8x128xf32>
    %38 = vector.shape_cast %37 : vector<1x8x128xf32> to vector<8x128xf32>
    %39 = arith.truncf %33 : vector<8x128xf32> to vector<8x128xbf16>
    %40 = vector.shape_cast %39 : vector<8x128xbf16> to vector<1x8x128xbf16>
    %41 = vector.shape_cast %40 : vector<1x8x128xbf16> to vector<1x8x128xbf16>
    %42 = vector.broadcast %41 : vector<1x8x128xbf16> to vector<2x8x128xbf16>
    %43 = arith.index_cast %c0_i32 : i32 to index
    %c0_13 = arith.constant 0 : index
    %c0_14 = arith.constant 0 : index
    %c0_15 = arith.constant 0 : index
    %44 = vector.load %arg4[%43, %c0_13, %c0_14, %c0_15] : memref<2x2x128x16xbf16, #tpu.memory_space<vmem>>, vector<1x2x128x16xbf16>
    %45 = vector.shape_cast %44 : vector<1x2x128x16xbf16> to vector<2x128x16xbf16>
    "tpu.trace_start"() <{level = 10 : i32, message = "nsh,nhd->nsd"}> : () -> ()
    %cst_16 = arith.constant dense<0.000000e+00> : vector<2x8x16xf32>
    %46 = tpu.matmul %42, %45, %cst_16 {dimension_numbers = #tpu.dot_dimension_numbers<[2], [1], [1], [2], [0, 0, 0, 1, 1, 2], [0], [0]>} : vector<2x8x128xbf16>, vector<2x128x16xbf16>, vector<2x8x16xf32> -> vector<2x8x16xf32>
    "tpu.trace_stop"() : () -> ()
    %47 = arith.index_cast %c0_i32 : i32 to index
    %c0_17 = arith.constant 0 : index
    %c0_18 = arith.constant 0 : index
    %c0_19 = arith.constant 0 : index
    %48 = vector.load %arg5[%47, %c0_17, %c0_18, %c0_19] : memref<2x2x128x16xbf16, #tpu.memory_space<vmem>>, vector<1x2x128x16xbf16>
    %49 = vector.shape_cast %48 : vector<1x2x128x16xbf16> to vector<2x128x16xbf16>
    "tpu.trace_start"() <{level = 10 : i32, message = "nsh,nhd->nsd"}> : () -> ()
    %cst_20 = arith.constant dense<0.000000e+00> : vector<2x8x16xf32>
    %50 = tpu.matmul %42, %49, %cst_20 {dimension_numbers = #tpu.dot_dimension_numbers<[2], [1], [1], [2], [0, 0, 0, 1, 1, 2], [0], [0]>} : vector<2x8x128xbf16>, vector<2x128x16xbf16>, vector<2x8x16xf32> -> vector<2x8x16xf32>
    "tpu.trace_stop"() : () -> ()
    %51 = arith.index_cast %c0_i32 : i32 to index
    %c0_21 = arith.constant 0 : index
    %c0_22 = arith.constant 0 : index
    %c0_23 = arith.constant 0 : index
    %52 = vector.load %arg6[%51, %c0_21, %c0_22, %c0_23] : memref<2x2x128x16xbf16, #tpu.memory_space<vmem>>, vector<1x2x128x16xbf16>
    %53 = vector.shape_cast %52 : vector<1x2x128x16xbf16> to vector<2x128x16xbf16>
    "tpu.trace_start"() <{level = 10 : i32, message = "nsh,nhd->nsd"}> : () -> ()
    %cst_24 = arith.constant dense<0.000000e+00> : vector<2x8x16xf32>
    %54 = tpu.matmul %42, %53, %cst_24 {dimension_numbers = #tpu.dot_dimension_numbers<[2], [1], [1], [2], [0, 0, 0, 1, 1, 2], [0], [0]>} : vector<2x8x128xbf16>, vector<2x128x16xbf16>, vector<2x8x16xf32> -> vector<2x8x16xf32>
    "tpu.trace_stop"() : () -> ()
    %55 = arith.truncf %46 : vector<2x8x16xf32> to vector<2x8x16xbf16>
    %56 = arith.truncf %50 : vector<2x8x16xf32> to vector<2x8x16xbf16>
    "tpu.trace_start"() <{level = 10 : i32, message = "nqd,nkd->nqk"}> : () -> ()
    %cst_25 = arith.constant dense<0.000000e+00> : vector<2x8x8xf32>
    %57 = tpu.matmul %55, %56, %cst_25 {dimension_numbers = #tpu.dot_dimension_numbers<[2], [2], [1], [1], [0, 0, 0, 1, 1, 1], [0], [0]>} : vector<2x8x16xbf16>, vector<2x8x16xbf16>, vector<2x8x8xf32> -> vector<2x8x8xf32>
    "tpu.trace_stop"() : () -> ()
    %58 = vector.shape_cast %35 : vector<1x8xf32> to vector<1x1x8xf32>
    %59 = vector.broadcast %58 : vector<1x1x8xf32> to vector<2x8x8xf32>
    %60 = arith.addf %57, %59 : vector<2x8x8xf32>
    %cst_26 = arith.constant dense<0xFF800000> : vector<2x8xf32>
    %61 = vector.multi_reduction <maximumf>, %60, %cst_26 [2] : vector<2x8x8xf32> to vector<2x8xf32>
    %62 = vector.shape_cast %61 : vector<2x8xf32> to vector<2x8x1xf32>
    %63 = vector.broadcast %62 : vector<2x8x1xf32> to vector<2x8x8xf32>
    %64 = arith.subf %60, %63 : vector<2x8x8xf32>
    %65 = math.exp %64 : vector<2x8x8xf32>
    %cst_27 = arith.constant dense<0.000000e+00> : vector<2x8xf32>
    %66 = vector.multi_reduction <add>, %65, %cst_27 [2] : vector<2x8x8xf32> to vector<2x8xf32>
    %67 = vector.shape_cast %66 : vector<2x8xf32> to vector<2x8x1xf32>
    %68 = tpu.reciprocal %67 {approx = true} : vector<2x8x1xf32> -> vector<2x8x1xf32>
    %69 = vector.broadcast %68 : vector<2x8x1xf32> to vector<2x8x8xf32>
    %70 = arith.mulf %65, %69 : vector<2x8x8xf32>
    %71 = arith.truncf %70 : vector<2x8x8xf32> to vector<2x8x8xbf16>
    %72 = arith.truncf %54 : vector<2x8x16xf32> to vector<2x8x16xbf16>
    "tpu.trace_start"() <{level = 10 : i32, message = "nqk,nkd->nqd"}> : () -> ()
    %cst_28 = arith.constant dense<0.000000e+00> : vector<2x8x16xf32>
    %73 = tpu.matmul %71, %72, %cst_28 {dimension_numbers = #tpu.dot_dimension_numbers<[2], [1], [1], [2], [0, 0, 0, 1, 1, 2], [0], [0]>} : vector<2x8x8xbf16>, vector<2x8x16xbf16>, vector<2x8x16xf32> -> vector<2x8x16xf32>
    "tpu.trace_stop"() : () -> ()
    %74 = arith.truncf %73 : vector<2x8x16xf32> to vector<2x8x16xbf16>
    %75 = arith.index_cast %c0_i32 : i32 to index
    %c0_29 = arith.constant 0 : index
    %c0_30 = arith.constant 0 : index
    %c0_31 = arith.constant 0 : index
    %76 = vector.load %arg7[%75, %c0_29, %c0_30, %c0_31] : memref<2x2x16x128xbf16, #tpu.memory_space<vmem>>, vector<1x2x16x128xbf16>
    %77 = vector.shape_cast %76 : vector<1x2x16x128xbf16> to vector<2x16x128xbf16>
    "tpu.trace_start"() <{level = 10 : i32, message = "nsd,ndh->nsh"}> : () -> ()
    %cst_32 = arith.constant dense<0.000000e+00> : vector<2x8x128xf32>
    %78 = tpu.matmul %74, %77, %cst_32 {dimension_numbers = #tpu.dot_dimension_numbers<[2], [1], [1], [2], [0, 0, 0, 1, 1, 2], [0], [0]>} : vector<2x8x16xbf16>, vector<2x16x128xbf16>, vector<2x8x128xf32> -> vector<2x8x128xf32>
    "tpu.trace_stop"() : () -> ()
    %cst_33 = arith.constant dense<0.000000e+00> : vector<8x128xf32>
    %79 = vector.multi_reduction <add>, %78, %cst_33 [0] : vector<2x8x128xf32> to vector<8x128xf32>
    %80 = vector.extract_strided_slice %38 {offsets = [0, 0], sizes = [1, 128], strides = [1, 1]} : vector<8x128xf32> to vector<1x128xf32>
    %81 = vector.broadcast %80 : vector<1x128xf32> to vector<8x128xf32>
    %82 = arith.addf %79, %81 : vector<8x128xf32>
    %83 = arith.addf %82, %33 : vector<8x128xf32>
    %84 = vector.extract_strided_slice %38 {offsets = [2, 0], sizes = [1, 128], strides = [1, 1]} : vector<8x128xf32> to vector<1x128xf32>
    %85 = vector.extract_strided_slice %38 {offsets = [3, 0], sizes = [1, 128], strides = [1, 1]} : vector<8x128xf32> to vector<1x128xf32>
    %86 = vector.broadcast %4 : vector<1x128xf32> to vector<8x128xf32>
    %87 = arith.mulf %83, %86 : vector<8x128xf32>
    %cst_34 = arith.constant dense<0.000000e+00> : vector<8xf32>
    %88 = vector.multi_reduction <add>, %87, %cst_34 [1] : vector<8x128xf32> to vector<8xf32>
    %89 = vector.shape_cast %88 : vector<8xf32> to vector<8x1xf32>
    %cst_35 = arith.constant 3.125000e-02 : f32
    %90 = vector.broadcast %cst_35 : f32 to vector<8x1xf32>
    %91 = arith.mulf %89, %90 : vector<8x1xf32>
    %92 = vector.broadcast %91 : vector<8x1xf32> to vector<8x128xf32>
    %93 = arith.subf %83, %92 : vector<8x128xf32>
    %94 = vector.broadcast %4 : vector<1x128xf32> to vector<8x128xf32>
    %95 = arith.mulf %93, %94 : vector<8x128xf32>
    %96 = arith.mulf %95, %95 : vector<8x128xf32>
    %cst_36 = arith.constant dense<0.000000e+00> : vector<8xf32>
    %97 = vector.multi_reduction <add>, %96, %cst_36 [1] : vector<8x128xf32> to vector<8xf32>
    %98 = vector.shape_cast %97 : vector<8xf32> to vector<8x1xf32>
    %cst_37 = arith.constant 3.125000e-02 : f32
    %99 = vector.broadcast %cst_37 : f32 to vector<8x1xf32>
    %100 = arith.mulf %98, %99 : vector<8x1xf32>
    %cst_38 = arith.constant 9.99999996E-13 : f32
    %101 = vector.broadcast %cst_38 : f32 to vector<8x1xf32>
    %102 = arith.addf %100, %101 : vector<8x1xf32>
    %103 = math.rsqrt %102 : vector<8x1xf32>
    %104 = vector.broadcast %103 : vector<8x1xf32> to vector<8x128xf32>
    %105 = arith.mulf %95, %104 : vector<8x128xf32>
    %106 = vector.broadcast %84 : vector<1x128xf32> to vector<8x128xf32>
    %107 = arith.mulf %105, %106 : vector<8x128xf32>
    %108 = vector.broadcast %85 : vector<1x128xf32> to vector<8x128xf32>
    %109 = arith.addf %107, %108 : vector<8x128xf32>
    %110 = arith.truncf %109 : vector<8x128xf32> to vector<8x128xbf16>
    %111 = arith.index_cast %c0_i32 : i32 to index
    %c0_39 = arith.constant 0 : index
    %c0_40 = arith.constant 0 : index
    %112 = vector.load %arg8[%111, %c0_39, %c0_40] : memref<2x128x128xbf16, #tpu.memory_space<vmem>>, vector<1x128x128xbf16>
    %113 = vector.shape_cast %112 : vector<1x128x128xbf16> to vector<128x128xbf16>
    %cst_41 = arith.constant dense<0.000000e+00> : vector<8x128xf32>
    %114 = tpu.matmul %110, %113, %cst_41 {dimension_numbers = #tpu.dot_dimension_numbers<[1], [0], [0], [1], [0, 0, 1, 1], [], []>} : vector<8x128xbf16>, vector<128x128xbf16>, vector<8x128xf32> -> vector<8x128xf32>
    %115 = arith.mulf %114, %114 : vector<8x128xf32>
    %116 = arith.mulf %114, %115 : vector<8x128xf32>
    %cst_42 = arith.constant 4.471500e-02 : f32
    %117 = vector.broadcast %cst_42 : f32 to vector<8x128xf32>
    %118 = arith.mulf %117, %116 : vector<8x128xf32>
    %119 = arith.addf %114, %118 : vector<8x128xf32>
    %cst_43 = arith.constant 0.797884583 : f32
    %120 = vector.broadcast %cst_43 : f32 to vector<8x128xf32>
    %121 = arith.mulf %120, %119 : vector<8x128xf32>
    %122 = math.tanh %121 : vector<8x128xf32>
    %cst_44 = arith.constant 1.000000e+00 : f32
    %123 = vector.broadcast %cst_44 : f32 to vector<8x128xf32>
    %124 = arith.addf %123, %122 : vector<8x128xf32>
    %cst_45 = arith.constant 5.000000e-01 : f32
    %125 = vector.broadcast %cst_45 : f32 to vector<8x128xf32>
    %126 = arith.mulf %125, %124 : vector<8x128xf32>
    %127 = arith.mulf %114, %126 : vector<8x128xf32>
    %128 = arith.truncf %127 : vector<8x128xf32> to vector<8x128xbf16>
    %129 = arith.index_cast %c0_i32 : i32 to index
    %c0_46 = arith.constant 0 : index
    %c0_47 = arith.constant 0 : index
    %130 = vector.load %arg9[%129, %c0_46, %c0_47] : memref<2x128x128xbf16, #tpu.memory_space<vmem>>, vector<1x128x128xbf16>
    %131 = vector.shape_cast %130 : vector<1x128x128xbf16> to vector<128x128xbf16>
    %cst_48 = arith.constant dense<0.000000e+00> : vector<8x128xf32>
    %132 = tpu.matmul %128, %131, %cst_48 {dimension_numbers = #tpu.dot_dimension_numbers<[1], [0], [0], [1], [0, 0, 1, 1], [], []>} : vector<8x128xbf16>, vector<128x128xbf16>, vector<8x128xf32> -> vector<8x128xf32>
    %133 = vector.extract_strided_slice %38 {offsets = [1, 0], sizes = [1, 128], strides = [1, 1]} : vector<8x128xf32> to vector<1x128xf32>
    %134 = vector.broadcast %133 : vector<1x128xf32> to vector<8x128xf32>
    %135 = arith.addf %132, %134 : vector<8x128xf32>
    %136 = arith.addf %135, %109 : vector<8x128xf32>
    %137 = vector.extract_strided_slice %38 {offsets = [4, 0], sizes = [1, 128], strides = [1, 1]} : vector<8x128xf32> to vector<1x128xf32>
    %138 = vector.extract_strided_slice %38 {offsets = [5, 0], sizes = [1, 128], strides = [1, 1]} : vector<8x128xf32> to vector<1x128xf32>
    %139 = vector.broadcast %4 : vector<1x128xf32> to vector<8x128xf32>
    %140 = arith.mulf %136, %139 : vector<8x128xf32>
    %cst_49 = arith.constant dense<0.000000e+00> : vector<8xf32>
    %141 = vector.multi_reduction <add>, %140, %cst_49 [1] : vector<8x128xf32> to vector<8xf32>
    %142 = vector.shape_cast %141 : vector<8xf32> to vector<8x1xf32>
    %cst_50 = arith.constant 3.125000e-02 : f32
    %143 = vector.broadcast %cst_50 : f32 to vector<8x1xf32>
    %144 = arith.mulf %142, %143 : vector<8x1xf32>
    %145 = vector.broadcast %144 : vector<8x1xf32> to vector<8x128xf32>
    %146 = arith.subf %136, %145 : vector<8x128xf32>
    %147 = vector.broadcast %4 : vector<1x128xf32> to vector<8x128xf32>
    %148 = arith.mulf %146, %147 : vector<8x128xf32>
    %149 = arith.mulf %148, %148 : vector<8x128xf32>
    %cst_51 = arith.constant dense<0.000000e+00> : vector<8xf32>
    %150 = vector.multi_reduction <add>, %149, %cst_51 [1] : vector<8x128xf32> to vector<8xf32>
    %151 = vector.shape_cast %150 : vector<8xf32> to vector<8x1xf32>
    %cst_52 = arith.constant 3.125000e-02 : f32
    %152 = vector.broadcast %cst_52 : f32 to vector<8x1xf32>
    %153 = arith.mulf %151, %152 : vector<8x1xf32>
    %cst_53 = arith.constant 9.99999996E-13 : f32
    %154 = vector.broadcast %cst_53 : f32 to vector<8x1xf32>
    %155 = arith.addf %153, %154 : vector<8x1xf32>
    %156 = math.rsqrt %155 : vector<8x1xf32>
    %157 = vector.broadcast %156 : vector<8x1xf32> to vector<8x128xf32>
    %158 = arith.mulf %148, %157 : vector<8x128xf32>
    %159 = vector.broadcast %137 : vector<1x128xf32> to vector<8x128xf32>
    %160 = arith.mulf %158, %159 : vector<8x128xf32>
    %161 = vector.broadcast %138 : vector<1x128xf32> to vector<8x128xf32>
    %162 = arith.addf %160, %161 : vector<8x128xf32>
    %c1_i32 = arith.constant 1 : i32
    %163 = arith.index_cast %c1_i32 : i32 to index
    %c0_54 = arith.constant 0 : index
    %c0_55 = arith.constant 0 : index
    %164 = vector.load %arg10[%163, %c0_54, %c0_55] : memref<2x8x128xf32, #tpu.memory_space<vmem>>, vector<1x8x128xf32>
    %165 = vector.shape_cast %164 : vector<1x8x128xf32> to vector<8x128xf32>
    %166 = arith.truncf %162 : vector<8x128xf32> to vector<8x128xbf16>
    %167 = vector.shape_cast %166 : vector<8x128xbf16> to vector<1x8x128xbf16>
    %168 = vector.shape_cast %167 : vector<1x8x128xbf16> to vector<1x8x128xbf16>
    %169 = vector.broadcast %168 : vector<1x8x128xbf16> to vector<2x8x128xbf16>
    %170 = arith.index_cast %c1_i32 : i32 to index
    %c0_56 = arith.constant 0 : index
    %c0_57 = arith.constant 0 : index
    %c0_58 = arith.constant 0 : index
    %171 = vector.load %arg4[%170, %c0_56, %c0_57, %c0_58] : memref<2x2x128x16xbf16, #tpu.memory_space<vmem>>, vector<1x2x128x16xbf16>
    %172 = vector.shape_cast %171 : vector<1x2x128x16xbf16> to vector<2x128x16xbf16>
    "tpu.trace_start"() <{level = 10 : i32, message = "nsh,nhd->nsd"}> : () -> ()
    %cst_59 = arith.constant dense<0.000000e+00> : vector<2x8x16xf32>
    %173 = tpu.matmul %169, %172, %cst_59 {dimension_numbers = #tpu.dot_dimension_numbers<[2], [1], [1], [2], [0, 0, 0, 1, 1, 2], [0], [0]>} : vector<2x8x128xbf16>, vector<2x128x16xbf16>, vector<2x8x16xf32> -> vector<2x8x16xf32>
    "tpu.trace_stop"() : () -> ()
    %174 = arith.index_cast %c1_i32 : i32 to index
    %c0_60 = arith.constant 0 : index
    %c0_61 = arith.constant 0 : index
    %c0_62 = arith.constant 0 : index
    %175 = vector.load %arg5[%174, %c0_60, %c0_61, %c0_62] : memref<2x2x128x16xbf16, #tpu.memory_space<vmem>>, vector<1x2x128x16xbf16>
    %176 = vector.shape_cast %175 : vector<1x2x128x16xbf16> to vector<2x128x16xbf16>
    "tpu.trace_start"() <{level = 10 : i32, message = "nsh,nhd->nsd"}> : () -> ()
    %cst_63 = arith.constant dense<0.000000e+00> : vector<2x8x16xf32>
    %177 = tpu.matmul %169, %176, %cst_63 {dimension_numbers = #tpu.dot_dimension_numbers<[2], [1], [1], [2], [0, 0, 0, 1, 1, 2], [0], [0]>} : vector<2x8x128xbf16>, vector<2x128x16xbf16>, vector<2x8x16xf32> -> vector<2x8x16xf32>
    "tpu.trace_stop"() : () -> ()
    %178 = arith.index_cast %c1_i32 : i32 to index
    %c0_64 = arith.constant 0 : index
    %c0_65 = arith.constant 0 : index
    %c0_66 = arith.constant 0 : index
    %179 = vector.load %arg6[%178, %c0_64, %c0_65, %c0_66] : memref<2x2x128x16xbf16, #tpu.memory_space<vmem>>, vector<1x2x128x16xbf16>
    %180 = vector.shape_cast %179 : vector<1x2x128x16xbf16> to vector<2x128x16xbf16>
    "tpu.trace_start"() <{level = 10 : i32, message = "nsh,nhd->nsd"}> : () -> ()
    %cst_67 = arith.constant dense<0.000000e+00> : vector<2x8x16xf32>
    %181 = tpu.matmul %169, %180, %cst_67 {dimension_numbers = #tpu.dot_dimension_numbers<[2], [1], [1], [2], [0, 0, 0, 1, 1, 2], [0], [0]>} : vector<2x8x128xbf16>, vector<2x128x16xbf16>, vector<2x8x16xf32> -> vector<2x8x16xf32>
    "tpu.trace_stop"() : () -> ()
    %182 = arith.truncf %173 : vector<2x8x16xf32> to vector<2x8x16xbf16>
    %183 = arith.truncf %177 : vector<2x8x16xf32> to vector<2x8x16xbf16>
    "tpu.trace_start"() <{level = 10 : i32, message = "nqd,nkd->nqk"}> : () -> ()
    %cst_68 = arith.constant dense<0.000000e+00> : vector<2x8x8xf32>
    %184 = tpu.matmul %182, %183, %cst_68 {dimension_numbers = #tpu.dot_dimension_numbers<[2], [2], [1], [1], [0, 0, 0, 1, 1, 1], [0], [0]>} : vector<2x8x16xbf16>, vector<2x8x16xbf16>, vector<2x8x8xf32> -> vector<2x8x8xf32>
    "tpu.trace_stop"() : () -> ()
    %185 = vector.shape_cast %35 : vector<1x8xf32> to vector<1x1x8xf32>
    %186 = vector.broadcast %185 : vector<1x1x8xf32> to vector<2x8x8xf32>
    %187 = arith.addf %184, %186 : vector<2x8x8xf32>
    %cst_69 = arith.constant dense<0xFF800000> : vector<2x8xf32>
    %188 = vector.multi_reduction <maximumf>, %187, %cst_69 [2] : vector<2x8x8xf32> to vector<2x8xf32>
    %189 = vector.shape_cast %188 : vector<2x8xf32> to vector<2x8x1xf32>
    %190 = vector.broadcast %189 : vector<2x8x1xf32> to vector<2x8x8xf32>
    %191 = arith.subf %187, %190 : vector<2x8x8xf32>
    %192 = math.exp %191 : vector<2x8x8xf32>
    %cst_70 = arith.constant dense<0.000000e+00> : vector<2x8xf32>
    %193 = vector.multi_reduction <add>, %192, %cst_70 [2] : vector<2x8x8xf32> to vector<2x8xf32>
    %194 = vector.shape_cast %193 : vector<2x8xf32> to vector<2x8x1xf32>
    %195 = tpu.reciprocal %194 {approx = true} : vector<2x8x1xf32> -> vector<2x8x1xf32>
    %196 = vector.broadcast %195 : vector<2x8x1xf32> to vector<2x8x8xf32>
    %197 = arith.mulf %192, %196 : vector<2x8x8xf32>
    %198 = arith.truncf %197 : vector<2x8x8xf32> to vector<2x8x8xbf16>
    %199 = arith.truncf %181 : vector<2x8x16xf32> to vector<2x8x16xbf16>
    "tpu.trace_start"() <{level = 10 : i32, message = "nqk,nkd->nqd"}> : () -> ()
    %cst_71 = arith.constant dense<0.000000e+00> : vector<2x8x16xf32>
    %200 = tpu.matmul %198, %199, %cst_71 {dimension_numbers = #tpu.dot_dimension_numbers<[2], [1], [1], [2], [0, 0, 0, 1, 1, 2], [0], [0]>} : vector<2x8x8xbf16>, vector<2x8x16xbf16>, vector<2x8x16xf32> -> vector<2x8x16xf32>
    "tpu.trace_stop"() : () -> ()
    %201 = arith.truncf %200 : vector<2x8x16xf32> to vector<2x8x16xbf16>
    %202 = arith.index_cast %c1_i32 : i32 to index
    %c0_72 = arith.constant 0 : index
    %c0_73 = arith.constant 0 : index
    %c0_74 = arith.constant 0 : index
    %203 = vector.load %arg7[%202, %c0_72, %c0_73, %c0_74] : memref<2x2x16x128xbf16, #tpu.memory_space<vmem>>, vector<1x2x16x128xbf16>
    %204 = vector.shape_cast %203 : vector<1x2x16x128xbf16> to vector<2x16x128xbf16>
    "tpu.trace_start"() <{level = 10 : i32, message = "nsd,ndh->nsh"}> : () -> ()
    %cst_75 = arith.constant dense<0.000000e+00> : vector<2x8x128xf32>
    %205 = tpu.matmul %201, %204, %cst_75 {dimension_numbers = #tpu.dot_dimension_numbers<[2], [1], [1], [2], [0, 0, 0, 1, 1, 2], [0], [0]>} : vector<2x8x16xbf16>, vector<2x16x128xbf16>, vector<2x8x128xf32> -> vector<2x8x128xf32>
    "tpu.trace_stop"() : () -> ()
    %cst_76 = arith.constant dense<0.000000e+00> : vector<8x128xf32>
    %206 = vector.multi_reduction <add>, %205, %cst_76 [0] : vector<2x8x128xf32> to vector<8x128xf32>
    %207 = vector.extract_strided_slice %165 {offsets = [0, 0], sizes = [1, 128], strides = [1, 1]} : vector<8x128xf32> to vector<1x128xf32>
    %208 = vector.broadcast %207 : vector<1x128xf32> to vector<8x128xf32>
    %209 = arith.addf %206, %208 : vector<8x128xf32>
    %210 = arith.addf %209, %162 : vector<8x128xf32>
    %211 = vector.extract_strided_slice %165 {offsets = [2, 0], sizes = [1, 128], strides = [1, 1]} : vector<8x128xf32> to vector<1x128xf32>
    %212 = vector.extract_strided_slice %165 {offsets = [3, 0], sizes = [1, 128], strides = [1, 1]} : vector<8x128xf32> to vector<1x128xf32>
    %213 = vector.broadcast %4 : vector<1x128xf32> to vector<8x128xf32>
    %214 = arith.mulf %210, %213 : vector<8x128xf32>
    %cst_77 = arith.constant dense<0.000000e+00> : vector<8xf32>
    %215 = vector.multi_reduction <add>, %214, %cst_77 [1] : vector<8x128xf32> to vector<8xf32>
    %216 = vector.shape_cast %215 : vector<8xf32> to vector<8x1xf32>
    %cst_78 = arith.constant 3.125000e-02 : f32
    %217 = vector.broadcast %cst_78 : f32 to vector<8x1xf32>
    %218 = arith.mulf %216, %217 : vector<8x1xf32>
    %219 = vector.broadcast %218 : vector<8x1xf32> to vector<8x128xf32>
    %220 = arith.subf %210, %219 : vector<8x128xf32>
    %221 = vector.broadcast %4 : vector<1x128xf32> to vector<8x128xf32>
    %222 = arith.mulf %220, %221 : vector<8x128xf32>
    %223 = arith.mulf %222, %222 : vector<8x128xf32>
    %cst_79 = arith.constant dense<0.000000e+00> : vector<8xf32>
    %224 = vector.multi_reduction <add>, %223, %cst_79 [1] : vector<8x128xf32> to vector<8xf32>
    %225 = vector.shape_cast %224 : vector<8xf32> to vector<8x1xf32>
    %cst_80 = arith.constant 3.125000e-02 : f32
    %226 = vector.broadcast %cst_80 : f32 to vector<8x1xf32>
    %227 = arith.mulf %225, %226 : vector<8x1xf32>
    %cst_81 = arith.constant 9.99999996E-13 : f32
    %228 = vector.broadcast %cst_81 : f32 to vector<8x1xf32>
    %229 = arith.addf %227, %228 : vector<8x1xf32>
    %230 = math.rsqrt %229 : vector<8x1xf32>
    %231 = vector.broadcast %230 : vector<8x1xf32> to vector<8x128xf32>
    %232 = arith.mulf %222, %231 : vector<8x128xf32>
    %233 = vector.broadcast %211 : vector<1x128xf32> to vector<8x128xf32>
    %234 = arith.mulf %232, %233 : vector<8x128xf32>
    %235 = vector.broadcast %212 : vector<1x128xf32> to vector<8x128xf32>
    %236 = arith.addf %234, %235 : vector<8x128xf32>
    %237 = arith.truncf %236 : vector<8x128xf32> to vector<8x128xbf16>
    %238 = arith.index_cast %c1_i32 : i32 to index
    %c0_82 = arith.constant 0 : index
    %c0_83 = arith.constant 0 : index
    %239 = vector.load %arg8[%238, %c0_82, %c0_83] : memref<2x128x128xbf16, #tpu.memory_space<vmem>>, vector<1x128x128xbf16>
    %240 = vector.shape_cast %239 : vector<1x128x128xbf16> to vector<128x128xbf16>
    %cst_84 = arith.constant dense<0.000000e+00> : vector<8x128xf32>
    %241 = tpu.matmul %237, %240, %cst_84 {dimension_numbers = #tpu.dot_dimension_numbers<[1], [0], [0], [1], [0, 0, 1, 1], [], []>} : vector<8x128xbf16>, vector<128x128xbf16>, vector<8x128xf32> -> vector<8x128xf32>
    %242 = arith.mulf %241, %241 : vector<8x128xf32>
    %243 = arith.mulf %241, %242 : vector<8x128xf32>
    %cst_85 = arith.constant 4.471500e-02 : f32
    %244 = vector.broadcast %cst_85 : f32 to vector<8x128xf32>
    %245 = arith.mulf %244, %243 : vector<8x128xf32>
    %246 = arith.addf %241, %245 : vector<8x128xf32>
    %cst_86 = arith.constant 0.797884583 : f32
    %247 = vector.broadcast %cst_86 : f32 to vector<8x128xf32>
    %248 = arith.mulf %247, %246 : vector<8x128xf32>
    %249 = math.tanh %248 : vector<8x128xf32>
    %cst_87 = arith.constant 1.000000e+00 : f32
    %250 = vector.broadcast %cst_87 : f32 to vector<8x128xf32>
    %251 = arith.addf %250, %249 : vector<8x128xf32>
    %cst_88 = arith.constant 5.000000e-01 : f32
    %252 = vector.broadcast %cst_88 : f32 to vector<8x128xf32>
    %253 = arith.mulf %252, %251 : vector<8x128xf32>
    %254 = arith.mulf %241, %253 : vector<8x128xf32>
    %255 = arith.truncf %254 : vector<8x128xf32> to vector<8x128xbf16>
    %256 = arith.index_cast %c1_i32 : i32 to index
    %c0_89 = arith.constant 0 : index
    %c0_90 = arith.constant 0 : index
    %257 = vector.load %arg9[%256, %c0_89, %c0_90] : memref<2x128x128xbf16, #tpu.memory_space<vmem>>, vector<1x128x128xbf16>
    %258 = vector.shape_cast %257 : vector<1x128x128xbf16> to vector<128x128xbf16>
    %cst_91 = arith.constant dense<0.000000e+00> : vector<8x128xf32>
    %259 = tpu.matmul %255, %258, %cst_91 {dimension_numbers = #tpu.dot_dimension_numbers<[1], [0], [0], [1], [0, 0, 1, 1], [], []>} : vector<8x128xbf16>, vector<128x128xbf16>, vector<8x128xf32> -> vector<8x128xf32>
    %260 = vector.extract_strided_slice %165 {offsets = [1, 0], sizes = [1, 128], strides = [1, 1]} : vector<8x128xf32> to vector<1x128xf32>
    %261 = vector.broadcast %260 : vector<1x128xf32> to vector<8x128xf32>
    %262 = arith.addf %259, %261 : vector<8x128xf32>
    %263 = arith.addf %262, %236 : vector<8x128xf32>
    %264 = vector.extract_strided_slice %165 {offsets = [4, 0], sizes = [1, 128], strides = [1, 1]} : vector<8x128xf32> to vector<1x128xf32>
    %265 = vector.extract_strided_slice %165 {offsets = [5, 0], sizes = [1, 128], strides = [1, 1]} : vector<8x128xf32> to vector<1x128xf32>
    %266 = vector.broadcast %4 : vector<1x128xf32> to vector<8x128xf32>
    %267 = arith.mulf %263, %266 : vector<8x128xf32>
    %cst_92 = arith.constant dense<0.000000e+00> : vector<8xf32>
    %268 = vector.multi_reduction <add>, %267, %cst_92 [1] : vector<8x128xf32> to vector<8xf32>
    %269 = vector.shape_cast %268 : vector<8xf32> to vector<8x1xf32>
    %cst_93 = arith.constant 3.125000e-02 : f32
    %270 = vector.broadcast %cst_93 : f32 to vector<8x1xf32>
    %271 = arith.mulf %269, %270 : vector<8x1xf32>
    %272 = vector.broadcast %271 : vector<8x1xf32> to vector<8x128xf32>
    %273 = arith.subf %263, %272 : vector<8x128xf32>
    %274 = vector.broadcast %4 : vector<1x128xf32> to vector<8x128xf32>
    %275 = arith.mulf %273, %274 : vector<8x128xf32>
    %276 = arith.mulf %275, %275 : vector<8x128xf32>
    %cst_94 = arith.constant dense<0.000000e+00> : vector<8xf32>
    %277 = vector.multi_reduction <add>, %276, %cst_94 [1] : vector<8x128xf32> to vector<8xf32>
    %278 = vector.shape_cast %277 : vector<8xf32> to vector<8x1xf32>
    %cst_95 = arith.constant 3.125000e-02 : f32
    %279 = vector.broadcast %cst_95 : f32 to vector<8x1xf32>
    %280 = arith.mulf %278, %279 : vector<8x1xf32>
    %cst_96 = arith.constant 9.99999996E-13 : f32
    %281 = vector.broadcast %cst_96 : f32 to vector<8x1xf32>
    %282 = arith.addf %280, %281 : vector<8x1xf32>
    %283 = math.rsqrt %282 : vector<8x1xf32>
    %284 = vector.broadcast %283 : vector<8x1xf32> to vector<8x128xf32>
    %285 = arith.mulf %275, %284 : vector<8x128xf32>
    %286 = vector.broadcast %264 : vector<1x128xf32> to vector<8x128xf32>
    %287 = arith.mulf %285, %286 : vector<8x128xf32>
    %288 = vector.broadcast %265 : vector<1x128xf32> to vector<8x128xf32>
    %289 = arith.addf %287, %288 : vector<8x128xf32>
    %c2_i32 = arith.constant 2 : i32
    %c0_97 = arith.constant 0 : index
    %c0_98 = arith.constant 0 : index
    %c0_99 = arith.constant 0 : index
    %290 = vector.load %arg11[%c0_97, %c0_98, %c0_99] : memref<1x8x128xf32, #tpu.memory_space<vmem>>, vector<1x8x128xf32>
    %291 = vector.shape_cast %290 : vector<1x8x128xf32> to vector<8x128xf32>
    %292 = vector.shape_cast %289 : vector<8x128xf32> to vector<1x8x128xf32>
    tpu.vector_store %arg11[%c0_97, %c0_98, %c0_99], %292 {strides = array<i32>} : memref<1x8x128xf32, #tpu.memory_space<vmem>>, vector<1x8x128xf32>,
    return
  }
  func.func @transform_0(%arg0: i32) -> (i32, i32, i32) {
    %c0_i32 = arith.constant 0 : i32
    %c0_i32_0 = arith.constant 0 : i32
    %c0_i32_1 = arith.constant 0 : i32
    return %arg0, %c0_i32, %c0_i32_0 : i32, i32, i32
  }
  func.func @transform_1(%arg0: i32) -> (i32, i32, i32) {
    %c0_i32 = arith.constant 0 : i32
    %c0_i32_0 = arith.constant 0 : i32
    %c0_i32_1 = arith.constant 0 : i32
    return %arg0, %c0_i32, %c0_i32_0 : i32, i32, i32
  }
  func.func @transform_2(%arg0: i32) -> (i32, i32) {
    %c0_i32 = arith.constant 0 : i32
    %c0_i32_0 = arith.constant 0 : i32
    %c0_i32_1 = arith.constant 0 : i32
    return %c0_i32, %c0_i32_0 : i32, i32
  }
  func.func @transform_3(%arg0: i32) -> (i32, i32, i32, i32) {
    %c0_i32 = arith.constant 0 : i32
    %c0_i32_0 = arith.constant 0 : i32
    %c0_i32_1 = arith.constant 0 : i32
    %c0_i32_2 = arith.constant 0 : i32
    %c0_i32_3 = arith.constant 0 : i32
    return %c0_i32, %c0_i32_0, %c0_i32_1, %c0_i32_2 : i32, i32, i32, i32
  }
  func.func @transform_4(%arg0: i32) -> (i32, i32, i32, i32) {
    %c0_i32 = arith.constant 0 : i32
    %c0_i32_0 = arith.constant 0 : i32
    %c0_i32_1 = arith.constant 0 : i32
    %c0_i32_2 = arith.constant 0 : i32
    %c0_i32_3 = arith.constant 0 : i32
    return %c0_i32, %c0_i32_0, %c0_i32_1, %c0_i32_2 : i32, i32, i32, i32
  }
  func.func @transform_5(%arg0: i32) -> (i32, i32, i32, i32) {
    %c0_i32 = arith.constant 0 : i32
    %c0_i32_0 = arith.constant 0 : i32
    %c0_i32_1 = arith.constant 0 : i32
    %c0_i32_2 = arith.constant 0 : i32
    %c0_i32_3 = arith.constant 0 : i32
    return %c0_i32, %c0_i32_0, %c0_i32_1, %c0_i32_2 : i32, i32, i32, i32
  }
  func.func @transform_6(%arg0: i32) -> (i32, i32, i32, i32) {
    %c0_i32 = arith.constant 0 : i32
    %c0_i32_0 = arith.constant 0 : i32
    %c0_i32_1 = arith.constant 0 : i32
    %c0_i32_2 = arith.constant 0 : i32
    %c0_i32_3 = arith.constant 0 : i32
    return %c0_i32, %c0_i32_0, %c0_i32_1, %c0_i32_2 : i32, i32, i32, i32
  }
  func.func @transform_7(%arg0: i32) -> (i32, i32, i32) {
    %c0_i32 = arith.constant 0 : i32
    %c0_i32_0 = arith.constant 0 : i32
    %c0_i32_1 = arith.constant 0 : i32
    %c0_i32_2 = arith.constant 0 : i32
    return %c0_i32, %c0_i32_0, %c0_i32_1 : i32, i32, i32
  }
  func.func @transform_8(%arg0: i32) -> (i32, i32, i32) {
    %c0_i32 = arith.constant 0 : i32
    %c0_i32_0 = arith.constant 0 : i32
    %c0_i32_1 = arith.constant 0 : i32
    %c0_i32_2 = arith.constant 0 : i32
    return %c0_i32, %c0_i32_0, %c0_i32_1 : i32, i32, i32
  }
  func.func @transform_9(%arg0: i32) -> (i32, i32, i32) {
    %c0_i32 = arith.constant 0 : i32
    %c0_i32_0 = arith.constant 0 : i32
    %c0_i32_1 = arith.constant 0 : i32
    %c0_i32_2 = arith.constant 0 : i32
    return %c0_i32, %c0_i32_0, %c0_i32_1 : i32, i32, i32
  }
  func.func @transform_10(%arg0: i32) -> (i32, i32, i32) {
    %c0_i32 = arith.constant 0 : i32
    %c0_i32_0 = arith.constant 0 : i32
    %c0_i32_1 = arith.constant 0 : i32
    return %arg0, %c0_i32, %c0_i32_0 : i32, i32, i32
  }
}

</mosaic_0001>

<bundles_post_ra>
// kernel: tpu_custom_call.1
= control target key start
LH: loop header
LB: loop body
LE: loop exit
PB: predicated region body
PF: predicated region fallthrough
CT: control target
= control target key end

     0   :  { %15 = vsyncpa [#allocation3], 0  ;;  %s3779_s0 = inlined_call_operand.vmem [shape: f32[2,8,128], index: 0, kind: input, shape index: {}]   ;;  %s3780_s1 = inlined_call_operand.vmem [shape: f32[2,1,8], index: 1, kind: input, shape index: {}]   ;;  %s3781_s2 = inlined_call_operand.vmem [shape: f32[2,128], index: 2, kind: input, shape index: {}]   ;;  %s3782_s3 = inlined_call_operand.vmem [shape: bf16[2,2,128,16], index: 3, kind: input, shape index: {}]   ;;  %s3783_s4 = inlined_call_operand.vmem [shape: bf16[2,2,128,16], index: 4, kind: input, shape index: {}]   ;;  %s3784_s5 = inlined_call_operand.vmem [shape: bf16[2,2,128,16], index: 5, kind: input, shape index: {}]   ;;  %s3785_s6 = inlined_call_operand.vmem [shape: bf16[2,2,16,128], index: 6, kind: input, shape index: {}]   ;;  %s3786_s7 = inlined_call_operand.vmem [shape: bf16[2,128,128], index: 7, kind: input, shape index: {}]   ;;  %s3787_s8 = inlined_call_operand.vmem [shape: bf16[2,128,128], index: 8, kind: input, shape index: {}]   ;;  %s3788_s9 = inlined_call_operand.vmem [shape: f32[2,8,128], index: 9, kind: input, shape index: {}]   ;;  %s3789_s10 = inlined_call_operand.hbm [shape: f32[2,8,128], index: 10, kind: output, shape index: {}]  }
   0x1   :  { %17 = vsyncpa [#allocation3 + $0x1], 0  ;;  %s3195_s13 = smov 0   ;;  %s3197_s14 = smov 0  }
   0x2   :  { %s3199_s15 = smov 0   ;;  %s3201_s16 = smov 0  }
   0x3 LB: > { %s3216_s17 = sadd.s32 4294967295, %s3137_s16   ;;  %s2188_s18 = sadd.s32 4294967294, %s3137_s16   ;;  %s3137_s16 = sphi %s3201_s16, %s3797_s16   ;;  %s3133_s15 = sphi %s3199_s15, %s3796_s15   ;;  %s3129_s14 = sphi %s3197_s14, %s3795_s14   ;;  %s3125_s13 = sphi %s3195_s13, %s3794_s13  }
   0x4   : > { %s3220_s19 = sadd.s32 1, %s3137_s16   ;;  %s250_s20 = sadd.s32 1, %s3133_s15 }
   0x5   : > { %s247_s21 = ssub.s32 %s3137_s16, %s3220_s19  ;;  %p260_p0 = scmp.ne.s32.totalorder %s3133_s15, %s3129_s14 }
   0x6   : > { %p248_p1 = scmp.eq.s32.totalorder %s247_s21, 0  ;;  %p261_p2 = scmp.eq.s32.totalorder %s3216_s17, 1 }
   0x7   : > { %p266_p3 = scmp.ne.s32.totalorder %s3129_s14, %s3125_s13  ;;  %p267_p4 = scmp.eq.s32.totalorder %s2188_s18, 1 }
   0x8   : > { %s3231_s22 = scalar_select %p248_p1, %s3133_s15, %s250_s20  }
   0x9   : > { %p3233_p5 = por %p261_p2, %p260_p0  ;;  %p3237_p6 = por %p267_p4, %p266_p3 }
   0xa   : > { %3790 = sst [smem:[#allocation5_spill]] %s3231_s22  ;;  %p2191_p7 = scmp.ge.s32.totalorder %s3137_s16, 1 }
   0xb   : > { %p322_p8 = scmp.lt.s32.totalorder %s3137_s16, 3 }
   0xd   : > { %p323_p9 = pnand %p2191_p7, %p322_p8 }
   0xe   : > { %p362_p10 = scmp.lt.s32.totalorder (!%p323_p9), %s3216_s17, 1  ;;  %s359_s22 = sand.u32 (!%p323_p9), 1, %s3129_s14  }
   0xf   : > { %326 = sbr.rel (%p323_p9) target bundleno = 3574 (0xdf6), region = 60  ;;  %s2192_s21 = sshll.u32 (!%p323_p9), %s359_s22, 3 }
  0x10   : > { %s2869_s27 = sshll.u32 (!%p323_p9), %s3216_s17, 3  ;;  %s361_s11 = scalar_lea.vmem (!%p323_p9), [#allocation2], %s2192_s21 }
  0x11   : > { %s2115_s30 = scalar_lea.hbm (!%p323_p9), %s3789_s10, %s2869_s27  ;;  %s3095_s28 = scalar_lea.hbm (!%p323_p9), %s3789_s10, 16 }
  0x14   : > { %v370_v0 = vlaneseq  ;;  %s3245_s25 = scalar_select %p362_p10, %s3216_s17, 1  ;;  %v3139_v2 = vmov 0.0   ;;  %v2879_v6 = vld [vmem:[%s3782_s3 + $0x38] sm:$0xff]  ;;  %v2878_v8 = vld [vmem:[%s3782_s3 + $0x30] sm:$0xff]  ;;  %v2877_v12 = vld [vmem:[%s3782_s3 + $0x28] sm:$0xff]  ;;  %vm875_vm4 = vcmask 130048  }
  0x15   : > { %v2887_v7 = vld [vmem:[%s3782_s3 + $0x78] sm:$0xff]  ;;  %486 = vmatpush.bf16.msra.mxu0 %v2879_v6  ;;  %v2886_v9 = vld [vmem:[%s3782_s3 + $0x70] sm:$0xff]  ;;  %v2885_v13 = vld [vmem:[%s3782_s3 + $0x68] sm:$0xff]  ;;  %vm944_vm5 = vcmask 1043456   ;;  %vm914_vm6 = vcmask 64512   ;;  %s2105_s17 = scalar_lea.sflag [#allocation3], %s359_s22 }
  0x16   : > { %v371_v1 = vand.u32 127, %v370_v0  ;;  %s2193_s26 = sshll.u32 %s3245_s25, 3  ;;  %s368_s29 = scalar_lea.vmem %s3780_s1, %s3245_s25  ;;  %547 = vmatpush.bf16.msra.mxu1 %v2887_v7  ;;  %v2895_v10 = vld [vmem:[%s3783_s4 + $0x38] sm:$0xff]  ;;  %v2876_v14 = vld [vmem:[%s3782_s3 + $0x20] sm:$0xff]  ;;  %v2894_v23 = vld [vmem:[%s3783_s4 + $0x30] sm:$0xff] }
  0x17   : > { %s365_s12 = scalar_lea.vmem %s3779_s0, %s2193_s26  ;;  %v2903_v11 = vld [vmem:[%s3783_s4 + $0x78] sm:$0xff]  ;;  %640 = vmatpush.bf16.msra.mxu2 %v2895_v10  ;;  %v2884_v15 = vld [vmem:[%s3782_s3 + $0x60] sm:$0xff]  ;;  %v2902_v24 = vld [vmem:[%s3783_s4 + $0x70] sm:$0xff]  ;;  %s2119_s25 = sshll.u32 %s2115_s30, 4  ;;  %s2120_s25 = int_to_ptr.hbm [resolvable:$true] %s2119_s25 }
  0x18   : > { %vm372_vm0 = vcmp.lt.s32.totalorder %v371_v1, 32  ;;  %v376_v4 = vld [vmem:[%s365_s12] sm:$0xff]  ;;  %701 = vmatpush.bf16.msra.mxu3 %v2903_v11  ;;  %v2875_v21 = vld [vmem:[%s3782_s3 + $0x18] sm:$0xff]  ;;  %v2874_v25 = vld [vmem:[%s3782_s3 + $0x10] sm:$0xff]  ;;  %s2117_s12 = sshll.u32 %s361_s11, 4  ;;  %s2118_s12 = int_to_ptr.vmem [resolvable:$true] %s2117_s12 }
  0x19   : > { %v3255_v3 = vsel %vm372_vm0, 1.0, %v3139_v2  ;;  %487 = vmatpush.bf16.msra.mxu0 %v2878_v8  ;;  %v2883_v22 = vld [vmem:[%s3782_s3 + $0x58] sm:$0xff]  ;;  %v2882_v26 = vld [vmem:[%s3782_s3 + $0x50] sm:$0xff]  ;;  %v2893_v27 = vld [vmem:[%s3783_s4 + $0x28] sm:$0xff] }
  0x1a   : > { %v377_v5 = vmul.f32 %v3255_v3, %v376_v4  ;;  %548 = vmatpush.bf16.msra.mxu1 %v2886_v9  ;;  %v2901_v28 = vld [vmem:[%s3783_s4 + $0x68] sm:$0xff]  ;;  %v2892_v31 = vld [vmem:[%s3783_s4 + $0x20] sm:$0xff]  ;;  %v2891_v35 = vld [vmem:[%s3783_s4 + $0x18] sm:$0xff] }
  0x1b   : > { %641 = vmatpush.bf16.msra.mxu2 %v2894_v23  ;;  %v2873_v29 = vld [vmem:[%s3782_s3 + $0x8] sm:$0xff]  ;;  %v2900_v32 = vld [vmem:[%s3783_s4 + $0x60] sm:$0xff]  ;;  %v2899_v36 = vld [vmem:[%s3783_s4 + $0x58] sm:$0xff] }
  0x1c   : > { %378 = vadd.xlane.f32.xlu0 %v377_v5  ;;  %702 = vmatpush.bf16.msra.mxu3 %v2902_v24  ;;  %v2881_v30 = vld [vmem:[%s3782_s3 + $0x48] sm:$0xff]  ;;  %v2872_v33 = vld [vmem:[%s3782_s3] sm:$0xff]  ;;  %v2911_v37 = vld [vmem:[%s3784_s5 + $0x38] sm:$0xff] }
  0x1d   : > { %488 = vmatpush.bf16.msra.mxu0 %v2877_v12  ;;  %v2880_v34 = vld [vmem:[%s3782_s3 + $0x40] sm:$0xff]  ;;  %v2919_v38 = vld [vmem:[%s3784_s5 + $0x78] sm:$0xff]  ;;  %v2890_v39 = vld [vmem:[%s3783_s4 + $0x10] sm:$0xff] }
  0x1e   : > { %549 = vmatpush.bf16.msra.mxu1 %v2885_v13  ;;  %v2898_v40 = vld [vmem:[%s3783_s4 + $0x50] sm:$0xff]  ;;  %v2889_v43 = vld [vmem:[%s3783_s4 + $0x8] sm:$0xff]  ;;  %v2888_v47 = vld [vmem:[%s3783_s4] sm:$0xff] }
  0x1f   : > { %642 = vmatpush.bf16.msra.mxu2 %v2893_v27  ;;  %v2910_v41 = vld [vmem:[%s3784_s5 + $0x30] sm:$0xff]  ;;  %v2897_v44 = vld [vmem:[%s3783_s4 + $0x48] sm:$0xff]  ;;  %v2896_v48 = vld [vmem:[%s3783_s4 + $0x40] sm:$0xff] }
  0x20   : > { %703 = vmatpush.bf16.msra.mxu3 %v2901_v28  ;;  %v2918_v42 = vld [vmem:[%s3784_s5 + $0x70] sm:$0xff]  ;;  %v2909_v45 = vld [vmem:[%s3784_s5 + $0x28] sm:$0xff]  ;;  %v2908_v49 = vld [vmem:[%s3784_s5 + $0x20] sm:$0xff] }
  0x21   : > { %489 = vmatpush.bf16.msra.mxu0 %v2876_v14  ;;  %v2917_v46 = vld [vmem:[%s3784_s5 + $0x68] sm:$0xff]  ;;  %v2916_v50 = vld [vmem:[%s3784_s5 + $0x60] sm:$0xff]  ;;  %v2907_v51 = vld [vmem:[%s3784_s5 + $0x18] sm:$0xff] }
  0x22   : > { %550 = vmatpush.bf16.msra.mxu1 %v2884_v15  ;;  %v2915_v52 = vld [vmem:[%s3784_s5 + $0x58] sm:$0xff]  ;;  %v2906_v55 = vld [vmem:[%s3784_s5 + $0x10] sm:$0xff]  ;;  %v2905_v58 = vld [vmem:[%s3784_s5 + $0x8] sm:$0xff] }
  0x23   : > { %643 = vmatpush.bf16.msra.mxu2 %v2892_v31  ;;  %v2914_v56 = vld [vmem:[%s3784_s5 + $0x50] sm:$0xff]  ;;  %v2913_v59 = vld [vmem:[%s3784_s5 + $0x48] sm:$0xff]  ;;  %v2904_v60 = vld [vmem:[%s3784_s5] sm:$0xff] }
  0x24   : > { %704 = vmatpush.bf16.msra.mxu3 %v2900_v32  ;;  %v2912_v61 = vld [vmem:[%s3784_s5 + $0x40] sm:$0xff] }
  0x25   : > { %490 = vmatpush.bf16.msra.mxu0 %v2875_v21  ;;  %v375_v2 = vld [vmem:[%s3781_s2] sm:$0x3] }
  0x26   : > { %551 = vmatpush.bf16.msra.mxu1 %v2883_v22  ;;  %v399_v6 = vperm.slane %v375_v2, 0  ;;  %v401_v8 = vperm.slane %v375_v2, 1 }
  0x27   : > { %644 = vmatpush.bf16.msra.mxu2 %v2891_v35  ;;  %v3426_v35 = vld [vmem:[%s368_s29] ss:$0 sm:$0xff]  ;;  %s3089_s29 = sshra.s32 %s2120_s25, 4  ;;  %s3090_s29 = int_to_ptr.hbm [resolvable:$true] %s3089_s29 }
  0x28   : > { %705 = vmatpush.bf16.msra.mxu3 %v2899_v36  ;;  %s3091_s18 = scalar_lea.hbm %s3090_s29, 8  ;;  %p3096_p0 = scmp.lt.s32.totalorder %s3090_s29, %s3789_s10 }
  0x29   : > { %491 = vmatpush.bf16.msra.mxu0 %v2874_v25  ;;  %p3092_p11 = scmp.ne.s32.totalorder %s3090_s29, %s3091_s18  ;;  %p3097_p1 = scmp.lt.s32.totalorder %s3095_s28, %s3091_s18 }
  0x2a   : > { %552 = vmatpush.bf16.msra.mxu1 %v2882_v26 }
  0x2b   : > { %645 = vmatpush.bf16.msra.mxu2 %v2890_v39  ;;  %p3093_p12 = pnand %p3092_p11, %p3233_p5  ;;  %p3098_p2 = por %p3097_p1, %p3096_p0 }
  0x2c   : > { %706 = vmatpush.bf16.msra.mxu3 %v2898_v40 }
  0x2d   : > { %492 = vmatpush.bf16.msra.mxu0 %v2873_v29  ;;  %p3094_p13 = pneg %p3093_p12 }
  0x2e   : > { %553 = vmatpush.bf16.msra.mxu1 %v2881_v30 }
  0x2f   : > { %646 = vmatpush.bf16.msra.mxu2 %v2889_v43  ;;  %p3099_p3 = pnand %p3098_p2, %p3094_p13 }
  0x30   : > { %707 = vmatpush.bf16.msra.mxu3 %v2897_v44 }
  0x31   : > { %493 = vmatpush.bf16.msra.mxu0 %v2872_v33 }
  0x32   : > { %554 = vmatpush.bf16.msra.mxu1 %v2880_v34 }
  0x33   : > { %647 = vmatpush.bf16.msra.mxu2 %v2888_v47 }
  0x34   : > { %708 = vmatpush.bf16.msra.mxu3 %v2896_v48 }
  0x35   : > { %794 = vmatpush.bf16.msrb.mxu0 %v2911_v37 }
  0x36   : > { %855 = vmatpush.bf16.msrb.mxu1 %v2919_v38 }
  0x39   : > { %795 = vmatpush.bf16.msrb.mxu0 %v2910_v41 }
  0x3a   : > { %856 = vmatpush.bf16.msrb.mxu1 %v2918_v42 }
  0x3d   : > { %796 = vmatpush.bf16.msrb.mxu0 %v2909_v45 }
  0x3e   : > { %857 = vmatpush.bf16.msrb.mxu1 %v2917_v46 }
  0x41   : > { %797 = vmatpush.bf16.msrb.mxu0 %v2908_v49 }
  0x42   : > { %858 = vmatpush.bf16.msrb.mxu1 %v2916_v50 }
  0x45   : > { %798 = vmatpush.bf16.msrb.mxu0 %v2907_v51 }
  0x46   : > { %859 = vmatpush.bf16.msrb.mxu1 %v2915_v52 }
  0x49   : > { %799 = vmatpush.bf16.msrb.mxu0 %v2906_v55 }
  0x4a   : > { %860 = vmatpush.bf16.msrb.mxu1 %v2914_v56 }
  0x4d   : > { %800 = vmatpush.bf16.msrb.mxu0 %v2905_v58 }
  0x4e   : > { %861 = vmatpush.bf16.msrb.mxu1 %v2913_v59 }
  0x51   : > { %801 = vmatpush.bf16.msrb.mxu0 %v2904_v60 }
  0x52   : > { %862 = vmatpush.bf16.msrb.mxu1 %v2912_v61 }
  0x8f   : > { %v379_v16 = vpop.xlane.xlu0 %378 }
  0x90   : > { %v380_v17 = vmul.f32 0.03125, %v379_v16 }
  0x92   : > { %v381_v18 = vsub.f32 %v376_v4, %v380_v17 }
  0x94   : > { %v3289_v19 = vmul.f32 %v3255_v3, %v381_v18 }
  0x96   : > { %v383_v20 = vmul.f32 %v3289_v19, %v3289_v19 }
  0x98   : > { %384 = vadd.xlane.f32.xlu0 %v383_v20 }
 0x10b   : > { %v385_v53 = vpop.xlane.xlu0 %384 }
 0x10c   : > { %v386_v54 = vmul.f32 0.03125, %v385_v53 }
 0x10e   : > { %v387_v57 = vadd.f32 1e-12, %v386_v54 }
 0x110   : > { %3045 = vrsqrt.f32 %v387_v57  ;;  %vm394_vm2 = vweird.f32 %v387_v57 }
 0x116   : > { %v3046_v62 = vpop.eup %3045 }
 0x117   : > { %v389_v63 = vmul.f32 %v3046_v62, %v387_v57  ;;  %vm395_vm1 = vweird.f32 %v3046_v62 }
 0x118   : > { %vm396_vm3 = vmor %vm394_vm2, %vm395_vm1 }
 0x119   : > { %v390_v0 = vmul.f32 %v3046_v62, %v389_v63  ;;  %v2921_v63 = vld [vmem:[%s3785_s6 + $0x8] sm:$0xff] }
 0x11b   : > { %v391_v1 = vmul.f32 0.5, %v390_v0 }
 0x11d   : > { %v392_v4 = vsub.f32 1.5, %v391_v1 }
 0x11f   : > { %v393_v5 = vmul.f32 %v3046_v62, %v392_v4 }
 0x121   : > { %v397_v7 = vsel %vm396_vm3, %v3046_v62, %v393_v5  ;;  %v2920_v62 = vld [vmem:[%s3785_s6] sm:$0xff] }
 0x122   : > { %v398_v9 = vmul.f32 %v397_v7, %v3289_v19 }
 0x124   : > { %v400_v10 = vmul.f32 %v399_v6, %v398_v9 }
 0x126   : > { %v3411_v11 = vadd.f32 %v401_v8, %v400_v10  ;;  %v3447_v8 = vld [vmem:[%s3788_s9] sm:$0xff] }
 0x127   : > { %v1031_v9 = vperm.slane %v3447_v8, 0 }
 0x128   : > { %v405_v12 = vpack.c.bf16 %v3411_v11, %v3411_v11 }
 0x12a   : > { %494 = vmatmul.bf16.vlgmr.msra.gmra.mxu0 %v405_v12  ;;  %555 = vmatmul.bf16.vlgmr.msra.gmra.mxu1 %v405_v12 }
 0x12b   : > { %648 = vmatmul.bf16.vlgmr.msra.gmra.mxu2 %v405_v12  ;;  %709 = vmatmul.bf16.vlgmr.msra.gmra.mxu3 %v405_v12 }
 0x13a   : > { %802 = vmatmul.bf16.vlgmr.msrb.gmra.mxu0 %v405_v12  ;;  %863 = vmatmul.bf16.vlgmr.msrb.gmra.mxu1 %v405_v12 }
 0x1a7   : > { %v495_v13 = vpop.f32.mrf.mxu0  ;;  %v556_v14 = vpop.f32.mrf.mxu1 }
 0x1a8   : > { %v868_v25 = vpack.c.bf16 %v495_v13, %v495_v13  ;;  %v869_v26 = vpack.c.bf16 %v556_v14, %v556_v14 }
 0x1ae   : > { %v649_v15 = vpop.f32.mrf.mxu2  ;;  %v710_v16 = vpop.f32.mrf.mxu3 }
 0x1af   : > { %v870_v17 = vpack.c.bf16 %v649_v15, %v649_v15  ;;  %v871_v18 = vpack.c.bf16 %v710_v16, %v710_v16  ;;  %v497_v19 = vpop.f32.mrf.mxu0  ;;  %v558_v20 = vpop.f32.mrf.mxu1 }
 0x1b1   : > { %v880_v21 = vsel %vm875_vm4, %v870_v17, 0  ;;  %v899_v22 = vsel %vm875_vm4, %v871_v18, 0  ;;  %v2929_v18 = vld [vmem:[%s3786_s7 + $0x38] sm:$0xff] }
 0x1b2   : > { %889 = vmatpush.bf16.xpose.msrb.mxu2 %v880_v21  ;;  %908 = vmatpush.bf16.xpose.msrb.mxu3 %v899_v22 }
 0x1b6   : > { %v651_v23 = vpop.f32.mrf.mxu2  ;;  %v712_v24 = vpop.f32.mrf.mxu3 }
 0x1b7   : > { %v803_v27 = vpop.f32.mrf.mxu0  ;;  %v864_v28 = vpop.f32.mrf.mxu1  ;;  %v2927_v24 = vld [vmem:[%s3786_s7 + $0x28] sm:$0xff] }
 0x1b8   : > { %v939_v29 = vpack.c.bf16 %v803_v27, %v803_v27  ;;  %v940_v30 = vpack.c.bf16 %v864_v28, %v864_v28  ;;  %v2924_v27 = vld [vmem:[%s3786_s7 + $0x10] sm:$0xff]  ;;  %v2923_v28 = vld [vmem:[%s3786_s7 + $0x8] sm:$0xff] }
 0x1b9   : > { %2387 = vmatmul.msk.bf16.vlgmr.msrb.gmra.mxu2 %vm875_vm4, %v868_v25  ;;  %2388 = vmatmul.msk.bf16.vlgmr.msrb.gmra.mxu3 %vm875_vm4, %v869_v26  ;;  %v2926_v25 = vld [vmem:[%s3786_s7 + $0x20] sm:$0xff]  ;;  %v2925_v26 = vld [vmem:[%s3786_s7 + $0x18] sm:$0xff] }
 0x1ba   : > { %v946_v31 = vsel %vm944_vm5, %v939_v29, 0  ;;  %v965_v32 = vsel %vm944_vm5, %v940_v30, 0  ;;  %v2922_v29 = vld [vmem:[%s3786_s7] sm:$0xff]  ;;  %v2937_v30 = vld [vmem:[%s3787_s8 + $0x38] sm:$0xff] }
 0x1bb   : > { %955 = vmatpush.bf16.msra.mxu2 %v946_v31  ;;  %974 = vmatpush.bf16.msra.mxu3 %v965_v32 }
 0x1bf   : > { %v805_v33 = vpop.f32.mrf.mxu0  ;;  %v866_v34 = vpop.f32.mrf.mxu1  ;;  %1002 = vmatpush.bf16.msrb.mxu2 %v2920_v62  ;;  %1024 = vmatpush.bf16.msrb.mxu3 %v2921_v63 }
 0x1c0   : > { %v2936_v33 = vld [vmem:[%s3787_s8 + $0x30] sm:$0xff] }
 0x23c   : > { %v891_v36 = vpop.f32.mrf.mxu2  ;;  %v910_v37 = vpop.f32.mrf.mxu3 }
 0x23d   : > { %v892_v38 = vadd.f32 %v3426_v35, %v891_v36  ;;  %v911_v40 = vadd.f32 %v3426_v35, %v910_v37 }
 0x23f   : > { %v915_v39 = vsel %vm914_vm6, %v892_v38, -inf  ;;  %v918_v43 = vsel %vm914_vm6, %v911_v40, -inf }
 0x240   : > { %916 = vmax.xlane.f32.xlu1 %v915_v39 }
 0x244   : > { %v893_v41 = vpop.f32.mrf.mxu2  ;;  %v912_v42 = vpop.f32.mrf.mxu3 }
 0x245   : > { %v1056_v42 = vperm.slane %v3447_v8, 2 }
 0x248   : > { %919 = vmax.xlane.f32.xlu1 %v918_v43 }
 0x2b3   : > { %v917_v44 = vpop.xlane.xlu1 %916 }
 0x2b4   : > { %v921_v45 = vsub.f32 %v892_v38, %v917_v44 }
 0x2b6   : > { %v923_v46 = vmul.f32 1.442695, %v921_v45  ;;  %v1058_v45 = vperm.slane %v3447_v8, 3 }
 0x2b8   : > { %3047 = vpow2.f32 %v923_v46 }
 0x2bb   : > { %v920_v47 = vpop.xlane.xlu1 %919 }
 0x2bc   : > { %v922_v48 = vsub.f32 %v911_v40, %v920_v47 }
 0x2be   : > { %v3048_v49 = vpop.eup %3047  ;;  %v925_v50 = vmul.f32 1.442695, %v922_v48 }
 0x2bf   : > { %v927_v51 = vsel %vm914_vm6, %v3048_v49, 0.0 }
 0x2c0   : > { %3049 = vpow2.f32 %v925_v50  ;;  %928 = vadd.xlane.f32.xlu2 %v927_v51  ;;  %v2934_v50 = vld [vmem:[%s3787_s8 + $0x20] sm:$0xff]  ;;  %v2933_v51 = vld [vmem:[%s3787_s8 + $0x18] sm:$0xff] }
 0x2c6   : > { %v3050_v52 = vpop.eup %3049 }
 0x2c7   : > { %v930_v53 = vsel %vm914_vm6, %v3050_v52, 0.0 }
 0x2c8   : > { %931 = vadd.xlane.f32.xlu2 %v930_v53  ;;  %v2931_v53 = vld [vmem:[%s3787_s8 + $0x8] sm:$0xff] }
 0x333   : > { %v929_v54 = vpop.xlane.xlu2 %928 }
 0x334   : > { %3051 = vrcp.f32 %v929_v54  ;;  %v2930_v54 = vld [vmem:[%s3787_s8] sm:$0xff] }
 0x33a   : > { %v3052_v55 = vpop.eup %3051 }
 0x33b   : > { %v935_v56 = vmul.f32 %v3052_v55, %v3048_v49  ;;  %v932_v57 = vpop.xlane.xlu2 %931  ;;  %v2935_v49 = vld [vmem:[%s3787_s8 + $0x28] sm:$0xff] }
 0x33c   : > { %3053 = vrcp.f32 %v932_v57 }
 0x33d   : > { %v937_v58 = vpack.c.bf16 %v935_v56, %v935_v56 }
 0x33f   : > { %2389 = vmatmul.msk.bf16.vlgmr.msra.gmra.mxu2 %vm914_vm6, %v937_v58 }
 0x340   : > { %1125 = vmatpush.bf16.msra.mxu2 %v2929_v18  ;;  %v2943_v18 = vld [vmem:[%s3782_s3 + $0xa8] sm:$0xff] }
 0x342   : > { %v3054_v59 = vpop.eup %3053 }
 0x343   : > { %v936_v60 = vmul.f32 %v3054_v59, %v3050_v52  ;;  %v2932_v52 = vld [vmem:[%s3787_s8 + $0x10] sm:$0xff] }
 0x345   : > { %v938_v61 = vpack.c.bf16 %v936_v60, %v936_v60 }
 0x347   : > { %2390 = vmatmul.msk.bf16.vlgmr.msra.gmra.mxu3 %vm914_vm6, %v938_v61 }
 0x348   : > { %1213 = vmatpush.bf16.msra.mxu3 %v2937_v30  ;;  %v2940_v30 = vld [vmem:[%s3782_s3 + $0x90] sm:$0xff] }
 0x34c   : > { %1214 = vmatpush.bf16.msra.mxu3 %v2936_v33  ;;  %v2967_v33 = vld [vmem:[%s3783_s4 + $0xe8] sm:$0xff] }
 0x350   : > { %1215 = vmatpush.bf16.msra.mxu3 %v2935_v49  ;;  %v2955_v49 = vld [vmem:[%s3783_s4 + $0x88] sm:$0xff] }
 0x354   : > { %1216 = vmatpush.bf16.msra.mxu3 %v2934_v50  ;;  %v2963_v50 = vld [vmem:[%s3783_s4 + $0xc8] sm:$0xff] }
 0x358   : > { %1217 = vmatpush.bf16.msra.mxu3 %v2933_v51  ;;  %v2975_v51 = vld [vmem:[%s3784_s5 + $0xa8] sm:$0xff] }
 0x35c   : > { %1218 = vmatpush.bf16.msra.mxu3 %v2932_v52  ;;  %v2983_v52 = vld [vmem:[%s3784_s5 + $0xe8] sm:$0xff] }
 0x360   : > { %1219 = vmatpush.bf16.msra.mxu3 %v2931_v53  ;;  %v2954_v53 = vld [vmem:[%s3783_s4 + $0x80] sm:$0xff] }
 0x364   : > { %1220 = vmatpush.bf16.msra.mxu3 %v2930_v54  ;;  %v2962_v54 = vld [vmem:[%s3783_s4 + $0xc0] sm:$0xff] }
 0x3c2   : > { %v957_v0 = vpop.f32.mrf.mxu2 }
 0x3c3   : > { %v980_v1 = vpack.c.bf16 %v957_v0, %v957_v0 }
 0x3c5   : > { %2395 = vmatmul.msk.bf16.vlgmr.msrb.gmra.mxu2 %vm875_vm4, %v980_v1 }
 0x3ca   : > { %v959_v2 = vpop.f32.mrf.mxu2  ;;  %v976_v4 = vpop.f32.mrf.mxu3 }
 0x3cb   : > { %v981_v5 = vpack.c.bf16 %v976_v4, %v976_v4  ;;  %v1164_v4 = vperm.slane %v3447_v8, 1 }
 0x3cd   : > { %2400 = vmatmul.msk.bf16.vlgmr.msrb.gmra.mxu3 %vm875_vm4, %v981_v5 }
 0x3d2   : > { %v978_v6 = vpop.f32.mrf.mxu3 }
 0x448   : > { %v1004_v7 = vpop.f32.mrf.mxu2 }
 0x450   : > { %v1006_v10 = vpop.f32.mrf.mxu2  ;;  %v1026_v12 = vpop.f32.mrf.mxu3 }
 0x451   : > { %v1030_v13 = vadd.f32 %v1026_v12, %v1004_v7  ;;  %v2945_v12 = vld [vmem:[%s3782_s3 + $0xb8] sm:$0xff] }
 0x452   : > { %1337 = vmatpush.bf16.msra.mxu0 %v2945_v12 }
 0x453   : > { %v1032_v14 = vadd.f32 %v1031_v9, %v1030_v13  ;;  %v2953_v13 = vld [vmem:[%s3782_s3 + $0xf8] sm:$0xff] }
 0x454   : > { %1398 = vmatpush.bf16.msra.mxu1 %v2953_v13  ;;  %v1249_v13 = vperm.slane %v3447_v8, 4 }
 0x455   : > { %v1033_v15 = vadd.f32 %v1032_v14, %v3411_v11  ;;  %v2928_v11 = vld [vmem:[%s3786_s7 + $0x30] sm:$0xff] }
 0x456   : > { %1126 = vmatpush.bf16.msra.mxu2 %v2928_v11  ;;  %v2944_v14 = vld [vmem:[%s3782_s3 + $0xb0] sm:$0xff] }
 0x457   : > { %v1034_v16 = vmul.f32 %v3255_v3, %v1033_v15  ;;  %1338 = vmatpush.bf16.msra.mxu0 %v2944_v14 }
 0x458   : > { %v1028_v17 = vpop.f32.mrf.mxu3 }
 0x459   : > { %1035 = vadd.xlane.f32.xlu0 %v1034_v16  ;;  %v2961_v16 = vld [vmem:[%s3783_s4 + $0xb8] sm:$0xff] }
 0x45a   : > { %1127 = vmatpush.bf16.msra.mxu2 %v2927_v24  ;;  %v2969_v17 = vld [vmem:[%s3783_s4 + $0xf8] sm:$0xff] }
 0x45b   : > { %1553 = vmatpush.bf16.msrb.mxu3 %v2969_v17  ;;  %1339 = vmatpush.bf16.msra.mxu0 %v2943_v18 }
 0x45e   : > { %1128 = vmatpush.bf16.msra.mxu2 %v2926_v25 }
 0x462   : > { %1129 = vmatpush.bf16.msra.mxu2 %v2925_v26  ;;  %v2941_v26 = vld [vmem:[%s3782_s3 + $0x98] sm:$0xff] }
 0x466   : > { %1130 = vmatpush.bf16.msra.mxu2 %v2924_v27  ;;  %v2949_v27 = vld [vmem:[%s3782_s3 + $0xd8] sm:$0xff] }
 0x46a   : > { %1131 = vmatpush.bf16.msra.mxu2 %v2923_v28  ;;  %v2960_v28 = vld [vmem:[%s3783_s4 + $0xb0] sm:$0xff] }
 0x46e   : > { %1132 = vmatpush.bf16.msra.mxu2 %v2922_v29  ;;  %v2968_v29 = vld [vmem:[%s3783_s4 + $0xf0] sm:$0xff] }
 0x46f   : > { %1554 = vmatpush.bf16.msrb.mxu3 %v2968_v29 }
 0x472   : > { %1492 = vmatpush.bf16.msrb.mxu2 %v2961_v16 }
 0x473   : > { %1555 = vmatpush.bf16.msrb.mxu3 %v2967_v33 }
 0x476   : > { %1493 = vmatpush.bf16.msrb.mxu2 %v2960_v28 }
 0x4cc   : > { %v1036_v19 = vpop.xlane.xlu0 %1035 }
 0x4cd   : > { %v1037_v20 = vmul.f32 0.03125, %v1036_v19  ;;  %v2951_v19 = vld [vmem:[%s3782_s3 + $0xe8] sm:$0xff] }
 0x4cf   : > { %v1038_v21 = vsub.f32 %v1033_v15, %v1037_v20  ;;  %v2952_v15 = vld [vmem:[%s3782_s3 + $0xf0] sm:$0xff]  ;;  %v2942_v20 = vld [vmem:[%s3782_s3 + $0xa0] sm:$0xff] }
 0x4d0   : > { %1399 = vmatpush.bf16.msra.mxu1 %v2952_v15  ;;  %1340 = vmatpush.bf16.msra.mxu0 %v2942_v20  ;;  %v1251_v15 = vperm.slane %v3447_v8, 5 }
 0x4d1   : > { %v1039_v22 = vmul.f32 %v3255_v3, %v1038_v21  ;;  %v2950_v21 = vld [vmem:[%s3782_s3 + $0xe0] sm:$0xff] }
 0x4d3   : > { %v1040_v23 = vmul.f32 %v1039_v22, %v1039_v22 }
 0x4d4   : > { %1400 = vmatpush.bf16.msra.mxu1 %v2951_v19  ;;  %1341 = vmatpush.bf16.msra.mxu0 %v2941_v26 }
 0x4d5   : > { %1041 = vadd.xlane.f32.xlu1 %v1040_v23 }
 0x4d8   : > { %1401 = vmatpush.bf16.msra.mxu1 %v2950_v21  ;;  %1342 = vmatpush.bf16.msra.mxu0 %v2940_v30 }
 0x4dc   : > { %1402 = vmatpush.bf16.msra.mxu1 %v2949_v27 }
 0x548   : > { %v1042_v31 = vpop.xlane.xlu1 %1041 }
 0x549   : > { %v1043_v32 = vmul.f32 0.03125, %v1042_v31  ;;  %v2948_v31 = vld [vmem:[%s3782_s3 + $0xd0] sm:$0xff] }
 0x54a   : > { %1403 = vmatpush.bf16.msra.mxu1 %v2948_v31 }
 0x54b   : > { %v1044_v34 = vadd.f32 1e-12, %v1043_v32  ;;  %v2959_v32 = vld [vmem:[%s3783_s4 + $0xa8] sm:$0xff] }
 0x54c   : > { %1494 = vmatpush.bf16.msrb.mxu2 %v2959_v32 }
 0x54d   : > { %3055 = vrsqrt.f32 %v1044_v34  ;;  %vm1051_vm8 = vweird.f32 %v1044_v34 }
 0x553   : > { %v3056_v36 = vpop.eup %3055 }
 0x554   : > { %v1046_v37 = vmul.f32 %v3056_v36, %v1044_v34  ;;  %vm1052_vm7 = vweird.f32 %v3056_v36  ;;  %v2939_v34 = vld [vmem:[%s3782_s3 + $0x88] sm:$0xff] }
 0x555   : > { %vm1053_vm9 = vmor %vm1051_vm8, %vm1052_vm7  ;;  %1343 = vmatpush.bf16.msra.mxu0 %v2939_v34 }
 0x556   : > { %v1047_v38 = vmul.f32 %v3056_v36, %v1046_v37  ;;  %v2958_v37 = vld [vmem:[%s3783_s4 + $0xa0] sm:$0xff] }
 0x557   : > { %1495 = vmatpush.bf16.msrb.mxu2 %v2958_v37 }
 0x558   : > { %v1048_v39 = vmul.f32 0.5, %v1047_v38  ;;  %v2966_v38 = vld [vmem:[%s3783_s4 + $0xe0] sm:$0xff] }
 0x559   : > { %1556 = vmatpush.bf16.msrb.mxu3 %v2966_v38 }
 0x55a   : > { %v1049_v40 = vsub.f32 1.5, %v1048_v39  ;;  %v2938_v39 = vld [vmem:[%s3782_s3 + $0x80] sm:$0xff] }
 0x55b   : > { %1344 = vmatpush.bf16.msra.mxu0 %v2938_v39 }
 0x55c   : > { %v1050_v41 = vmul.f32 %v3056_v36, %v1049_v40  ;;  %v2946_v40 = vld [vmem:[%s3782_s3 + $0xc0] sm:$0xff] }
 0x55e   : > { %v1054_v43 = vsel %vm1053_vm9, %v3056_v36, %v1050_v41  ;;  %v2947_v36 = vld [vmem:[%s3782_s3 + $0xc8] sm:$0xff]  ;;  %v2957_v41 = vld [vmem:[%s3783_s4 + $0x98] sm:$0xff] }
 0x55f   : > { %v1055_v44 = vmul.f32 %v1054_v43, %v1039_v22  ;;  %1404 = vmatpush.bf16.msra.mxu1 %v2947_v36  ;;  %v2977_v43 = vld [vmem:[%s3784_s5 + $0xb8] sm:$0xff]  ;;  %1496 = vmatpush.bf16.msrb.mxu2 %v2957_v41 }
 0x560   : > { %1647 = vmatpush.bf16.msrb.mxu0 %v2977_v43 }
 0x561   : > { %v1057_v46 = vmul.f32 %v1056_v42, %v1055_v44  ;;  %v2965_v42 = vld [vmem:[%s3783_s4 + $0xd8] sm:$0xff] }
 0x562   : > { %v2985_v44 = vld [vmem:[%s3784_s5 + $0xf8] sm:$0xff]  ;;  %1557 = vmatpush.bf16.msrb.mxu3 %v2965_v42 }
 0x563   : > { %v1059_v47 = vadd.f32 %v1058_v45, %v1057_v46  ;;  %1405 = vmatpush.bf16.msra.mxu1 %v2946_v40  ;;  %v2956_v45 = vld [vmem:[%s3783_s4 + $0x90] sm:$0xff] }
 0x564   : > { %v2964_v46 = vld [vmem:[%s3783_s4 + $0xd0] sm:$0xff]  ;;  %1497 = vmatpush.bf16.msrb.mxu2 %v2956_v45 }
 0x565   : > { %v1060_v48 = vpack.c.bf16 %v1059_v47, %v1059_v47 }
 0x566   : > { %1558 = vmatpush.bf16.msrb.mxu3 %v2964_v46 }
 0x567   : > { %1133 = vmatmul.bf16.vlgmr.msra.gmra.mxu2 %v1060_v48  ;;  %1708 = vmatpush.bf16.msrb.mxu1 %v2985_v44  ;;  %v2984_v48 = vld [vmem:[%s3784_s5 + $0xf0] sm:$0xff] }
 0x568   : > { %1498 = vmatpush.bf16.msrb.mxu2 %v2955_v49 }
 0x56a   : > { %1559 = vmatpush.bf16.msrb.mxu3 %v2963_v50 }
 0x56b   : > { %1709 = vmatpush.bf16.msrb.mxu1 %v2984_v48 }
 0x56c   : > { %1499 = vmatpush.bf16.msrb.mxu2 %v2954_v53 }
 0x56e   : > { %1560 = vmatpush.bf16.msrb.mxu3 %v2962_v54 }
 0x56f   : > { %1710 = vmatpush.bf16.msrb.mxu1 %v2983_v52 }
 0x5ea   : > { %v1134_v55 = vpop.f32.mrf.mxu2 }
 0x5eb   : > { %v1138_v56 = vmul.f32 %v1134_v55, %v1134_v55 }
 0x5ed   : > { %v1139_v57 = vmul.f32 %v1138_v56, %v1134_v55  ;;  %v2982_v56 = vld [vmem:[%s3784_s5 + $0xe0] sm:$0xff] }
 0x5ee   : > { %1711 = vmatpush.bf16.msrb.mxu1 %v2982_v56 }
 0x5ef   : > { %v1140_v58 = vmul.f32 0.044715, %v1139_v57  ;;  %v2973_v57 = vld [vmem:[%s3784_s5 + $0x98] sm:$0xff] }
 0x5f1   : > { %v1141_v59 = vadd.f32 %v1140_v58, %v1134_v55  ;;  %v2981_v58 = vld [vmem:[%s3784_s5 + $0xd8] sm:$0xff] }
 0x5f2   : > { %v1136_v60 = vpop.f32.mrf.mxu2  ;;  %1712 = vmatpush.bf16.msrb.mxu1 %v2981_v58  ;;  %v2986_v58 = vld [vmem:[%s3785_s6 + $0x10] sm:$0xff] }
 0x5f3   : > { %v1142_v61 = vmul.f32 0.7978846, %v1141_v59 }
 0x5f5   : > { %3057 = vtanh.f32 %v1142_v61  ;;  %v2972_v61 = vld [vmem:[%s3784_s5 + $0x90] sm:$0xff] }
 0x5fb   : > { %v3058_v62 = vpop.eup %3057 }
 0x5fc   : > { %v1144_v63 = vadd.f32 1.0, %v3058_v62  ;;  %v2980_v62 = vld [vmem:[%s3784_s5 + $0xd0] sm:$0xff] }
 0x5fd   : > { %1713 = vmatpush.bf16.msrb.mxu1 %v2980_v62 }
 0x5fe   : > { %v1145_v0 = vmul.f32 0.5, %v1144_v63 }
 0x600   : > { %v1146_v1 = vmul.f32 %v1145_v0, %v1134_v55  ;;  %v2974_v55 = vld [vmem:[%s3784_s5 + $0xa0] sm:$0xff]  ;;  %v2971_v0 = vld [vmem:[%s3784_s5 + $0x88] sm:$0xff] }
 0x602   : > { %v1147_v2 = vpack.c.bf16 %v1146_v1, %v1146_v1  ;;  %v2979_v1 = vld [vmem:[%s3784_s5 + $0xc8] sm:$0xff] }
 0x603   : > { %1714 = vmatpush.bf16.msrb.mxu1 %v2979_v1 }
 0x604   : > { %1221 = vmatmul.bf16.vlgmr.msra.gmra.mxu3 %v1147_v2  ;;  %v2970_v2 = vld [vmem:[%s3784_s5 + $0x80] sm:$0xff] }
 0x687   : > { %v1222_v5 = vpop.f32.mrf.mxu3 }
 0x688   : > { %v1223_v6 = vadd.f32 %v1222_v5, %v1164_v4  ;;  %v2978_v4 = vld [vmem:[%s3784_s5 + $0xc0] sm:$0xff] }
 0x689   : > { %1715 = vmatpush.bf16.msrb.mxu1 %v2978_v4 }
 0x68a   : > { %v1226_v7 = vadd.f32 %v1223_v6, %v1059_v47  ;;  %v2976_v47 = vld [vmem:[%s3784_s5 + $0xb0] sm:$0xff] }
 0x68b   : > { %1648 = vmatpush.bf16.msrb.mxu0 %v2976_v47 }
 0x68c   : > { %v1227_v9 = vmul.f32 %v3255_v3, %v1226_v7 }
 0x68e   : > { %1228 = vadd.xlane.f32.xlu2 %v1227_v9 }
 0x68f   : > { %v1224_v10 = vpop.f32.mrf.mxu3  ;;  %1649 = vmatpush.bf16.msrb.mxu0 %v2975_v51 }
 0x693   : > { %1650 = vmatpush.bf16.msrb.mxu0 %v2974_v55 }
 0x697   : > { %1651 = vmatpush.bf16.msrb.mxu0 %v2973_v57 }
 0x69b   : > { %1652 = vmatpush.bf16.msrb.mxu0 %v2972_v61 }
 0x69f   : > { %1653 = vmatpush.bf16.msrb.mxu0 %v2971_v0 }
 0x6a3   : > { %1654 = vmatpush.bf16.msrb.mxu0 %v2970_v2 }
 0x701   : > { %v1229_v22 = vpop.xlane.xlu2 %1228 }
 0x702   : > { %v1230_v23 = vmul.f32 0.03125, %v1229_v22 }
 0x704   : > { %v1231_v11 = vsub.f32 %v1226_v7, %v1230_v23 }
 0x706   : > { %v3536_v24 = vmul.f32 %v3255_v3, %v1231_v11 }
 0x708   : > { %v1233_v25 = vmul.f32 %v3536_v24, %v3536_v24 }
 0x70a   : > { %1234 = vadd.xlane.f32.xlu0 %v1233_v25 }
 0x77d   : > { %v1235_v59 = vpop.xlane.xlu0 %1234 }
 0x77e   : > { %v1236_v60 = vmul.f32 0.03125, %v1235_v59  ;;  %v2987_v59 = vld [vmem:[%s3785_s6 + $0x18] sm:$0xff] }
 0x780   : > { %v1237_v63 = vadd.f32 1e-12, %v1236_v60 }
 0x782   : > { %3059 = vrsqrt.f32 %v1237_v63  ;;  %vm1244_vm11 = vweird.f32 %v1237_v63 }
 0x788   : > { %v3060_v5 = vpop.eup %3059 }
 0x789   : > { %v1239_v6 = vmul.f32 %v3060_v5, %v1237_v63  ;;  %vm1245_vm10 = vweird.f32 %v3060_v5 }
 0x78a   : > { %vm1246_vm12 = vmor %vm1244_vm11, %vm1245_vm10 }
 0x78b   : > { %v1240_v7 = vmul.f32 %v3060_v5, %v1239_v6 }
 0x78d   : > { %v1241_v9 = vmul.f32 0.5, %v1240_v7 }
 0x78f   : > { %v1242_v10 = vsub.f32 1.5, %v1241_v9 }
 0x791   : > { %v1243_v12 = vmul.f32 %v3060_v5, %v1242_v10 }
 0x793   : > { %v1247_v14 = vsel %vm1246_vm12, %v3060_v5, %v1243_v12 }
 0x794   : > { %v1248_v16 = vmul.f32 %v1247_v14, %v3536_v24 }
 0x796   : > { %v1250_v17 = vmul.f32 %v1249_v13, %v1248_v16  ;;  %v3686_v13 = vld [vmem:[%s3788_s9 + $0x8] sm:$0xff] }
 0x798   : > { %v3657_v18 = vadd.f32 %v1251_v15, %v1250_v17  ;;  %v1879_v15 = vperm.slane %v3686_v13, 0 }
 0x79a   : > { %v1255_v19 = vpack.c.bf16 %v3657_v18, %v3657_v18 }
 0x79c   : > { %1345 = vmatmul.bf16.vlgmr.msra.gmra.mxu0 %v1255_v19  ;;  %1406 = vmatmul.bf16.vlgmr.msra.gmra.mxu1 %v1255_v19 }
 0x79d   : > { %1500 = vmatmul.bf16.vlgmr.msrb.gmra.mxu2 %v1255_v19  ;;  %1561 = vmatmul.bf16.vlgmr.msrb.gmra.mxu3 %v1255_v19 }
 0x7ac   : > { %1655 = vmatmul.bf16.vlgmr.msrb.gmra.mxu0 %v1255_v19  ;;  %1716 = vmatmul.bf16.vlgmr.msrb.gmra.mxu1 %v1255_v19 }
 0x819   : > { %v1346_v20 = vpop.f32.mrf.mxu0  ;;  %v1407_v21 = vpop.f32.mrf.mxu1 }
 0x81a   : > { %v1721_v30 = vpack.c.bf16 %v1346_v20, %v1346_v20  ;;  %v1722_v31 = vpack.c.bf16 %v1407_v21, %v1407_v21 }
 0x820   : > { %v1501_v22 = vpop.f32.mrf.mxu2  ;;  %v1562_v23 = vpop.f32.mrf.mxu3 }
 0x821   : > { %v1723_v11 = vpack.c.bf16 %v1501_v22, %v1501_v22  ;;  %v1724_v8 = vpack.c.bf16 %v1562_v23, %v1562_v23  ;;  %v1348_v25 = vpop.f32.mrf.mxu0  ;;  %v1409_v24 = vpop.f32.mrf.mxu1 }
 0x823   : > { %v1729_v26 = vsel %vm875_vm4, %v1723_v11, 0  ;;  %v1748_v27 = vsel %vm875_vm4, %v1724_v8, 0  ;;  %v2995_v11 = vld [vmem:[%s3786_s7 + $0x78] sm:$0xff] }
 0x824   : > { %1738 = vmatpush.bf16.xpose.msra.mxu2 %v1729_v26  ;;  %1757 = vmatpush.bf16.xpose.msra.mxu3 %v1748_v27 }
 0x828   : > { %v1503_v28 = vpop.f32.mrf.mxu2  ;;  %v1564_v29 = vpop.f32.mrf.mxu3 }
 0x829   : > { %v1656_v32 = vpop.f32.mrf.mxu0  ;;  %v1717_v33 = vpop.f32.mrf.mxu1  ;;  %v2993_v28 = vld [vmem:[%s3786_s7 + $0x68] sm:$0xff]  ;;  %v2992_v29 = vld [vmem:[%s3786_s7 + $0x60] sm:$0xff] }
 0x82a   : > { %v1787_v34 = vpack.c.bf16 %v1656_v32, %v1656_v32  ;;  %v1788_v36 = vpack.c.bf16 %v1717_v33, %v1717_v33  ;;  %v2989_v32 = vld [vmem:[%s3786_s7 + $0x48] sm:$0xff]  ;;  %v2988_v33 = vld [vmem:[%s3786_s7 + $0x40] sm:$0xff] }
 0x82b   : > { %2754 = vmatmul.msk.bf16.vlgmr.msra.gmra.mxu2 %vm875_vm4, %v1721_v30  ;;  %2755 = vmatmul.msk.bf16.vlgmr.msra.gmra.mxu3 %vm875_vm4, %v1722_v31  ;;  %v2991_v30 = vld [vmem:[%s3786_s7 + $0x58] sm:$0xff]  ;;  %v2990_v31 = vld [vmem:[%s3786_s7 + $0x50] sm:$0xff] }
 0x82c   : > { %v1793_v37 = vsel %vm944_vm5, %v1787_v34, 0  ;;  %v1812_v38 = vsel %vm944_vm5, %v1788_v36, 0  ;;  %1850 = vmatpush.bf16.msrb.mxu2 %v2986_v58  ;;  %1872 = vmatpush.bf16.msrb.mxu3 %v2987_v59  ;;  %v3003_v34 = vld [vmem:[%s3787_s8 + $0x78] sm:$0xff] }
 0x82d   : > { %1802 = vmatpush.bf16.msra.mxu0 %v1793_v37  ;;  %1821 = vmatpush.bf16.msra.mxu1 %v1812_v38  ;;  %v3002_v38 = vld [vmem:[%s3787_s8 + $0x70] sm:$0xff] }
 0x831   : > { %v1658_v39 = vpop.f32.mrf.mxu0  ;;  %v1719_v40 = vpop.f32.mrf.mxu1  ;;  %1974 = vmatpush.bf16.msrb.mxu0 %v2995_v11  ;;  %2063 = vmatpush.bf16.msrb.mxu1 %v3003_v34 }
 0x835   : > { %2064 = vmatpush.bf16.msrb.mxu1 %v3002_v38 }
 0x8ae   : > { %v1740_v41 = vpop.f32.mrf.mxu2  ;;  %v1759_v42 = vpop.f32.mrf.mxu3 }
 0x8af   : > { %v1741_v43 = vadd.f32 %v3426_v35, %v1740_v41  ;;  %v1760_v44 = vadd.f32 %v3426_v35, %v1759_v42 }
 0x8b1   : > { %v1766_v45 = vsel %vm914_vm6, %v1760_v44, -inf  ;;  %v1763_v46 = vsel %vm914_vm6, %v1741_v43, -inf }
 0x8b2   : > { %1767 = vmax.xlane.f32.xlu2 %v1766_v45  ;;  %1764 = vmax.xlane.f32.xlu1 %v1763_v46  ;;  %v1904_v46 = vperm.slane %v3686_v13, 2 }
 0x8b6   : > { %v1742_v47 = vpop.f32.mrf.mxu2  ;;  %v1761_v48 = vpop.f32.mrf.mxu3 }
 0x925   : > { %v1768_v49 = vpop.xlane.xlu2 %1767  ;;  %v1765_v50 = vpop.xlane.xlu1 %1764 }
 0x926   : > { %v1770_v51 = vsub.f32 %v1760_v44, %v1768_v49  ;;  %v1769_v52 = vsub.f32 %v1741_v43, %v1765_v50  ;;  %v1906_v49 = vperm.slane %v3686_v13, 3 }
 0x928   : > { %v1773_v53 = vmul.f32 1.442695, %v1770_v51  ;;  %v1771_v54 = vmul.f32 1.442695, %v1769_v52 }
 0x92a   : > { %3061 = vpow2.f32 %v1773_v53  ;;  %v3001_v53 = vld [vmem:[%s3787_s8 + $0x68] sm:$0xff] }
 0x92b   : > { %3063 = vpow2.f32 %v1771_v54  ;;  %2065 = vmatpush.bf16.msrb.mxu1 %v3001_v53  ;;  %v3000_v54 = vld [vmem:[%s3787_s8 + $0x60] sm:$0xff] }
 0x92f   : > { %2066 = vmatpush.bf16.msrb.mxu1 %v3000_v54 }
 0x930   : > { %v3062_v55 = vpop.eup %3061 }
 0x931   : > { %v3064_v56 = vpop.eup %3063  ;;  %v1778_v35 = vsel %vm914_vm6, %v3062_v55, 0.0 }
 0x932   : > { %1779 = vadd.xlane.f32.xlu1 %v1778_v35  ;;  %v1775_v57 = vsel %vm914_vm6, %v3064_v56, 0.0  ;;  %v2997_v35 = vld [vmem:[%s3787_s8 + $0x48] sm:$0xff] }
 0x933   : > { %1776 = vadd.xlane.f32.xlu0 %v1775_v57  ;;  %v2996_v57 = vld [vmem:[%s3787_s8 + $0x40] sm:$0xff] }
 0x9a5   : > { %v1780_v60 = vpop.xlane.xlu1 %1779 }
 0x9a6   : > { %v1777_v61 = vpop.xlane.xlu0 %1776  ;;  %3065 = vrcp.f32 %v1780_v60 }
 0x9a7   : > { %3067 = vrcp.f32 %v1777_v61 }
 0x9ac   : > { %v3066_v62 = vpop.eup %3065 }
 0x9ad   : > { %v3068_v63 = vpop.eup %3067  ;;  %v1784_v0 = vmul.f32 %v3066_v62, %v3062_v55  ;;  %v2999_v55 = vld [vmem:[%s3787_s8 + $0x58] sm:$0xff] }
 0x9ae   : > { %v1783_v1 = vmul.f32 %v3068_v63, %v3064_v56  ;;  %2067 = vmatpush.bf16.msrb.mxu1 %v2999_v55  ;;  %v2998_v56 = vld [vmem:[%s3787_s8 + $0x50] sm:$0xff] }
 0x9af   : > { %v1786_v2 = vpack.c.bf16 %v1784_v0, %v1784_v0 }
 0x9b0   : > { %v1785_v4 = vpack.c.bf16 %v1783_v1, %v1783_v1 }
 0x9b1   : > { %2757 = vmatmul.msk.bf16.vlgmr.msra.gmra.mxu1 %vm914_vm6, %v1786_v2 }
 0x9b2   : > { %2756 = vmatmul.msk.bf16.vlgmr.msra.gmra.mxu0 %vm914_vm6, %v1785_v4  ;;  %2068 = vmatpush.bf16.msrb.mxu1 %v2998_v56 }
 0x9b6   : > { %2069 = vmatpush.bf16.msrb.mxu1 %v2997_v35 }
 0x9ba   : > { %2070 = vmatpush.bf16.msrb.mxu1 %v2996_v57 }
 0xa2e   : > { %v1823_v5 = vpop.f32.mrf.mxu1 }
 0xa2f   : > { %v1804_v6 = vpop.f32.mrf.mxu0  ;;  %v1828_v7 = vpack.c.bf16 %v1823_v5, %v1823_v5 }
 0xa30   : > { %v1827_v9 = vpack.c.bf16 %v1804_v6, %v1804_v6 }
 0xa31   : > { %2771 = vmatmul.msk.bf16.vlgmr.msrb.gmra.mxu3 %vm875_vm4, %v1828_v7  ;;  %v2014_v7 = vperm.slane %v3686_v13, 1 }
 0xa32   : > { %2766 = vmatmul.msk.bf16.vlgmr.msrb.gmra.mxu2 %vm875_vm4, %v1827_v9 }
 0xa36   : > { %v1825_v10 = vpop.f32.mrf.mxu1 }
 0xa37   : > { %v1806_v12 = vpop.f32.mrf.mxu0 }
 0xab4   : > { %v1874_v14 = vpop.f32.mrf.mxu3 }
 0xab5   : > { %v1852_v16 = vpop.f32.mrf.mxu2 }
 0xab6   : > { %v1878_v17 = vadd.f32 %v1874_v14, %v1852_v16 }
 0xab8   : > { %v1880_v19 = vadd.f32 %v1879_v15, %v1878_v17 }
 0xaba   : > { %v1881_v20 = vadd.f32 %v1880_v19, %v3657_v18  ;;  %v2994_v18 = vld [vmem:[%s3786_s7 + $0x70] sm:$0xff] }
 0xabb   : > { %1975 = vmatpush.bf16.msrb.mxu0 %v2994_v18 }
 0xabc   : > { %v1876_v21 = vpop.f32.mrf.mxu3  ;;  %v1882_v22 = vmul.f32 %v3255_v3, %v1881_v20 }
 0xabd   : > { %v1854_v23 = vpop.f32.mrf.mxu2 }
 0xabe   : > { %1883 = vadd.xlane.f32.xlu2 %v1882_v22 }
 0xabf   : > { %1976 = vmatpush.bf16.msrb.mxu0 %v2993_v28 }
 0xac3   : > { %1977 = vmatpush.bf16.msrb.mxu0 %v2992_v29 }
 0xac7   : > { %1978 = vmatpush.bf16.msrb.mxu0 %v2991_v30  ;;  %v2101_v30 = vperm.slane %v3686_v13, 5 }
 0xacb   : > { %1979 = vmatpush.bf16.msrb.mxu0 %v2990_v31 }
 0xacf   : > { %1980 = vmatpush.bf16.msrb.mxu0 %v2989_v32 }
 0xad3   : > { %1981 = vmatpush.bf16.msrb.mxu0 %v2988_v33 }
 0xb31   : > { %v1884_v8 = vpop.xlane.xlu2 %1883 }
 0xb32   : > { %v1885_v25 = vmul.f32 0.03125, %v1884_v8 }
 0xb34   : > { %v1886_v24 = vsub.f32 %v1881_v20, %v1885_v25 }
 0xb36   : > { %v1887_v26 = vmul.f32 %v3255_v3, %v1886_v24 }
 0xb38   : > { %v1888_v27 = vmul.f32 %v1887_v26, %v1887_v26 }
 0xb3a   : > { %1889 = vadd.xlane.f32.xlu0 %v1888_v27 }
 0xbad   : > { %v1890_v36 = vpop.xlane.xlu0 %1889 }
 0xbae   : > { %v1891_v37 = vmul.f32 0.03125, %v1890_v36 }
 0xbb0   : > { %v1892_v39 = vadd.f32 1e-12, %v1891_v37 }
 0xbb2   : > { %3069 = vrsqrt.f32 %v1892_v39  ;;  %vm1899_vm14 = vweird.f32 %v1892_v39 }
 0xbb8   : > { %v3070_v40 = vpop.eup %3069 }
 0xbb9   : > { %v1894_v41 = vmul.f32 %v3070_v40, %v1892_v39  ;;  %vm1900_vm13 = vweird.f32 %v3070_v40 }
 0xbba   : > { %vm1901_vm15 = vmor %vm1899_vm14, %vm1900_vm13 }
 0xbbb   : > { %v1895_v42 = vmul.f32 %v3070_v40, %v1894_v41 }
 0xbbd   : > { %v1896_v43 = vmul.f32 0.5, %v1895_v42 }
 0xbbf   : > { %v1897_v44 = vsub.f32 1.5, %v1896_v43 }
 0xbc1   : > { %v1898_v45 = vmul.f32 %v3070_v40, %v1897_v44 }
 0xbc3   : > { %v1902_v47 = vsel %vm1901_vm15, %v3070_v40, %v1898_v45 }
 0xbc4   : > { %v1903_v48 = vmul.f32 %v1902_v47, %v1887_v26 }
 0xbc6   : > { %v1905_v50 = vmul.f32 %v1904_v46, %v1903_v48 }
 0xbc8   : > { %v1907_v51 = vadd.f32 %v1906_v49, %v1905_v50 }
 0xbca   : > { %v1908_v52 = vpack.c.bf16 %v1907_v51, %v1907_v51 }
 0xbcc   : > { %1982 = vmatmul.bf16.vlgmr.msrb.gmra.mxu0 %v1908_v52 }
 0xc49   : > { %v1983_v58 = vpop.f32.mrf.mxu0 }
 0xc4a   : > { %v1987_v59 = vmul.f32 %v1983_v58, %v1983_v58 }
 0xc4c   : > { %v1988_v60 = vmul.f32 %v1987_v59, %v1983_v58 }
 0xc4e   : > { %v1989_v61 = vmul.f32 0.044715, %v1988_v60 }
 0xc50   : > { %v1990_v62 = vadd.f32 %v1989_v61, %v1983_v58 }
 0xc51   : > { %v1985_v63 = vpop.f32.mrf.mxu0 }
 0xc52   : > { %v1991_v0 = vmul.f32 0.7978846, %v1990_v62 }
 0xc54   : > { %3071 = vtanh.f32 %v1991_v0 }
 0xc5a   : > { %v3072_v1 = vpop.eup %3071 }
 0xc5b   : > { %v1993_v2 = vadd.f32 1.0, %v3072_v1 }
 0xc5d   : > { %v1994_v4 = vmul.f32 0.5, %v1993_v2 }
 0xc5f   : > { %v1995_v5 = vmul.f32 %v1994_v4, %v1983_v58 }
 0xc61   : > { %v1996_v6 = vpack.c.bf16 %v1995_v5, %v1995_v5 }
 0xc63   : > { %2071 = vmatmul.bf16.vlgmr.msrb.gmra.mxu1 %v1996_v6 }
 0xce0   : > { %v2072_v9 = vpop.f32.mrf.mxu1 }
 0xce1   : > { %v2073_v10 = vadd.f32 %v2072_v9, %v2014_v7 }
 0xce3   : > { %v2076_v12 = vadd.f32 %v2073_v10, %v1907_v51 }
 0xce5   : > { %v2077_v14 = vmul.f32 %v3255_v3, %v2076_v12 }
 0xce7   : > { %2078 = vadd.xlane.f32.xlu1 %v2077_v14 }
 0xce8   : > { %v2074_v15 = vpop.f32.mrf.mxu1 }
 0xd5a   : > { %v2079_v16 = vpop.xlane.xlu1 %2078 }
 0xd5b   : > { %v2080_v17 = vmul.f32 0.03125, %v2079_v16 }
 0xd5d   : > { %v2081_v19 = vsub.f32 %v2076_v12, %v2080_v17 }
 0xd5f   : > { %v2082_v20 = vmul.f32 %v3255_v3, %v2081_v19  ;;  %v2099_v3 = vperm.slane %v3686_v13, 4 }
 0xd61   : > { %v2083_v21 = vmul.f32 %v2082_v20, %v2082_v20 }
 0xd63   : > { %2084 = vadd.xlane.f32.xlu2 %v2083_v21 }
 0xdd6   : > { %v2085_v22 = vpop.xlane.xlu2 %2084 }
 0xdd7   : > { %v2086_v23 = vmul.f32 0.03125, %v2085_v22 }
 0xdd9   : > { %v2087_v11 = vadd.f32 1e-12, %v2086_v23 }
 0xddb   : > { %3073 = vrsqrt.f32 %v2087_v11  ;;  %vm2094_vm1 = vweird.f32 %v2087_v11 }
 0xde1   : > { %v3074_v8 = vpop.eup %3073 }
 0xde2   : > { %v2089_v25 = vmul.f32 %v3074_v8, %v2087_v11  ;;  %vm2095_vm0 = vweird.f32 %v3074_v8 }
 0xde3   : > { %vm2096_vm2 = vmor %vm2094_vm1, %vm2095_vm0 }
 0xde4   : > { %v2090_v24 = vmul.f32 %v3074_v8, %v2089_v25 }
 0xde6   : > { %v2091_v26 = vmul.f32 0.5, %v2090_v24 }
 0xde8   : > { %v2092_v27 = vsub.f32 1.5, %v2091_v26 }
 0xdea   : > { %v2093_v18 = vmul.f32 %v3074_v8, %v2092_v27 }
 0xdec   : > { %v2097_v28 = vsel %vm2096_vm2, %v3074_v8, %v2093_v18 }
 0xded   : > { %v2098_v29 = vmul.f32 %v2097_v28, %v2082_v20 }
 0xdef   : > { %v2100_v31 = vmul.f32 %v2099_v3, %v2098_v29 }
 0xdf1   : > { %v2102_v32 = vadd.f32 %v2101_v30, %v2100_v31 }
 0xdf3   : > { %2103 = vst [vmem:[%s361_s11] sm:$0xff] %v2102_v32 }
 0xdf4   : > { %3102 = shalt.err (!%p3099_p3)
}
 0xdf5   : > { %3004 = dma.vmem_to_hbm [thread:$0]  (%p3233_p5), %s2118_s12, 128, %s2120_s25, %s2105_s17  }
 0xdf6 PF: > { %p3010_p4 = scmp.ge.s32.totalorder %s3137_s16, 2  ;;  %s2131_s22 = sand.u32 1, %s3125_s13  }
 0xdf7   : > { %s2132_s30 = scalar_lea.sflag [#allocation3], %s2131_s22 }
 0xdf8   : > { %p3007_p7 = pnand %p3010_p4, %p3237_p6 }
 0xdfa   : > { %p3008_p8 = pneg %p3007_p7 }
 0xdfc   : > { %3120 = dma.done.wait (%p3008_p8), %s2132_s30, 128  }
 0xdfd   : > { %3122 = vsyncadd (%p3008_p8), %s2132_s30, 4294967168  ;;  %s3793_s11 = sld [smem:[#allocation5_spill]]  ;;  %p20_p9 = scmp.ge.s32.totalorder %s3220_s19, 4  }
 0xdfe   : > { %s3794_s13 = smov %s3129_s14  ;;  %s3795_s14 = smov %s3133_s15 }
 0xdff   : > { %s3797_s16 = smov %s3220_s19  ;;  %22 = sbr.rel (!%p20_p9) target bundleno = 3 (0x3), region = 105 }
 0xe03   : > { %s3796_s15 = smov %s3793_s11 }
 0xe04   :  { %2138 = vsyncpa [#allocation3], 1 }
 0xe05   :  { %2140 = vsyncpa [#allocation3 + $0x1], 1 }

</bundles_post_ra>
